<compile_context>
chip_gen: v5e
topology: v5e:2x2
jax: 0.10.0
libtpu: 0.0.40
codegen_flags: <defaults>
</compile_context>

<pallas_src>
import functools

import jax
import jax.numpy as jnp
from jax.experimental import pallas as pl
from jax.experimental.pallas import tpu as pltpu


HIDDEN_PAD = 128  # pad hidden channels to a full 128-lane vreg


def vlp_rsna_kernel(x_ref, wconv_ref, bconv_ref, whead_ref, bhead_ref,
                    logit_ref, gap_ref):
    # x_ref:     (1, TR+2, W+2, C) bf16 halo'd NHWC image row tile (pre-padded)
    # wconv_ref: (9, C, HP)        bf16, slice k = dy*3+dx of the 3x3 conv weight
    # bconv_ref: (1, HP)           f32 conv bias (zero-padded to HP)
    # whead_ref: (HP, n_cls)       f32 folded (proj @ classifier) / (H*W) weight
    # bhead_ref: (1, n_cls)        f32 folded head bias
    # logit_ref: (1, 1, n_cls)     f32 output block for this batch element
    # gap_ref:   (1, HP)           f32 scratch: running spatial sum of ReLU(conv)
    t = pl.program_id(1)

    @pl.when(t == 0)
    def _init():
        gap_ref[...] = jnp.zeros_like(gap_ref)

    _, tr_p2, w_p2, c = x_ref.shape
    tr, w = tr_p2 - 2, w_p2 - 2

    # 3x3 conv (pad=1, stride=1) as 9 shifted 2-D matmuls, f32 accumulation.
    def window(k):
        dy, dx = divmod(k, 3)
        return x_ref[0, dy:dy + tr, dx:dx + w, :].reshape(tr * w, c)  # bf16

    acc = jnp.dot(window(0), wconv_ref[0], preferred_element_type=jnp.float32)
    for k in range(1, 9):
        acc = acc + jnp.dot(window(k), wconv_ref[k],
                            preferred_element_type=jnp.float32)      # (tr*w, HP)

    # bias + ReLU in f32, lane-dense (HP = 128); one reduction for the GAP sum.
    feat = jnp.maximum(acc + bconv_ref[...], 0.0)
    gap_ref[...] += jnp.sum(feat, axis=0, keepdims=True)             # (1, HP)

    @pl.when(t == pl.num_programs(1) - 1)
    def _finalize():
        # 1/(H*W) is pre-folded into whead, so this is sum @ W + b directly.
        logits = jnp.dot(gap_ref[...], whead_ref[...],
                         preferred_element_type=jnp.float32) + bhead_ref[...]
        logit_ref[0] = logits.astype(logit_ref.dtype)


def _prep_image_tiles(img_nchw, tile_rows):
    """NCHW f32 image -> halo'd bf16 row tiles [B*NT, TR+2, W+2, C] (NHWC)."""
    B, C, H, W = img_nchw.shape
    assert H % tile_rows == 0, "H must be divisible by tile_rows"
    nt = H // tile_rows
    x = jnp.transpose(img_nchw, (0, 2, 3, 1)).astype(jnp.float32)   # NHWC
    x = jnp.pad(x, ((0, 0), (1, 1), (1, 1), (0, 0)))                # conv pad=1
    rows = (jnp.arange(nt)[:, None] * tile_rows
            + jnp.arange(tile_rows + 2)[None, :])                   # [NT, TR+2]
    tiles = x[:, rows]                                              # [B, NT, TR+2, W+2, C]
    tiles = tiles.reshape(B * nt, tile_rows + 2, W + 2, C)
    return tiles.astype(jnp.bfloat16), nt


def _prep_kernel_params(params, hw, hidden_pad=HIDDEN_PAD):
    wconv = params["wconv"]                       # [hidden, C, 3, 3] (PyTorch OIHW)
    hidden, c = wconv.shape[0], wconv.shape[1]
    assert hidden <= hidden_pad
    # per-offset slices: wk[dy*3+dx] = wconv[:, :, dy, dx].T -> [C, hidden], pad to HP
    wk = jnp.transpose(wconv, (2, 3, 1, 0)).reshape(9, c, hidden)
    wk = jnp.pad(wk, ((0, 0), (0, 0), (0, hidden_pad - hidden))).astype(jnp.bfloat16)
    bconv = jnp.pad(params["bconv"], (0, hidden_pad - hidden)).reshape(1, hidden_pad)
    # fold projection (hidden->128), classifier (weight=text_emb, bias=0) and the
    # global-average-pool 1/(H*W) scale into a single [HP, n_cls] head.
    whead = (params["wproj"] @ params["wcls"].T) * (1.0 / float(hw))  # [hidden, n_cls]
    whead = jnp.pad(whead, ((0, hidden_pad - hidden), (0, 0)))        # [HP, n_cls]
    bhead = (params["bproj"] @ params["wcls"].T + params["bcls"]).reshape(1, -1)
    return (wk, bconv.astype(jnp.float32),
            whead.astype(jnp.float32), bhead.astype(jnp.float32))


def vlp_rsna_forward(img_nchw, params, *, tile_rows=8):
    """Full forward pass of VLP_RSNA_Model (with synthetic image encoder)."""
    B, C, H, W = img_nchw.shape
    tiles, nt = _prep_image_tiles(img_nchw, tile_rows)
    wk, bconv, whead, bhead = _prep_kernel_params(params, H * W)
    hp = wk.shape[-1]
    n_cls = whead.shape[-1]

    out = pl.pallas_call(
        vlp_rsna_kernel,
        out_shape=jax.ShapeDtypeStruct((B, 1, n_cls), jnp.float32),
        grid=(B, nt),
        in_specs=[
            # image row tiles stream through; weights stay VMEM-resident
            pl.BlockSpec((1, tile_rows + 2, W + 2, C),
                         lambda b, t, nt=nt: (b * nt + t, 0, 0, 0)),
            pl.BlockSpec((9, C, hp), lambda b, t: (0, 0, 0)),
            pl.BlockSpec((1, hp), lambda b, t: (0, 0)),
            pl.BlockSpec((hp, n_cls), lambda b, t: (0, 0)),
            pl.BlockSpec((1, n_cls), lambda b, t: (0, 0)),
        ],
        out_specs=pl.BlockSpec((1, 1, n_cls), lambda b, t: (b, 0, 0)),
        scratch_shapes=[pltpu.VMEM((1, hp), jnp.float32)],
        compiler_params=pltpu.CompilerParams(
            dimension_semantics=("parallel", "arbitrary")),
    )(tiles, wk, bconv, whead, bhead)
    return out.reshape(B, n_cls)


def make_params(key, C=4, hidden=32, emb_dim=128, n_cls=2):
    """Deterministic parameter init (synthetic; no checkpoint load)."""
    k1, k2, k3, k4 = jax.random.split(key, 4)
    wconv = jax.random.normal(k1, (hidden, C, 3, 3), jnp.float32) * 0.1
    bconv = jax.random.normal(k2, (hidden,), jnp.float32) * 0.01
    wproj = jax.random.normal(k3, (hidden, emb_dim), jnp.float32) * 0.05
    bproj = jnp.zeros((emb_dim,), jnp.float32)
    text_emb = jax.random.normal(k4, (n_cls, emb_dim), jnp.float32) * 0.05  # classifier.weight
    bcls = jnp.zeros((n_cls,), jnp.float32)                                  # classifier.bias
    return {"wconv": wconv, "bconv": bconv, "wproj": wproj, "bproj": bproj,
            "wcls": text_emb, "bcls": bcls}


def reference_forward(img_nchw, params):
    """Pure-JAX reference (same bf16 conv operands; unfused two-step head)."""
    B, C, H, W = img_nchw.shape
    x = jnp.transpose(img_nchw, (0, 2, 3, 1)).astype(jnp.bfloat16)
    w = jnp.transpose(params["wconv"], (2, 3, 1, 0)).astype(jnp.bfloat16)   # HWIO
    feat = jax.lax.conv_general_dilated(
        x, w, window_strides=(1, 1), padding="SAME",
        dimension_numbers=("NHWC", "HWIO", "NHWC"),
        preferred_element_type=jnp.float32)                                  # [B,H,W,hidden]
    feat = jnp.maximum(feat + params["bconv"], 0.0)
    gap = jnp.mean(feat.reshape(B, H * W, -1), axis=1)                       # [B, hidden]
    emb = gap @ params["wproj"] + params["bproj"]                            # [B, 128]
    return emb @ params["wcls"].T + params["bcls"]                           # [B, 2]


if __name__ == "__main__":
    key = jax.random.PRNGKey(0)
    k_img, k_par = jax.random.split(key)

    B, C, H, W = 2, 4, 16, 16
    img = jax.random.normal(k_img, (B, C, H, W), jnp.float32)
    params = make_params(k_par, C=C, hidden=32, emb_dim=128, n_cls=2)

    fwd = jax.jit(functools.partial(vlp_rsna_forward, tile_rows=8))
    logits = jax.block_until_ready(fwd(img, params))
    ref = jax.block_until_ready(reference_forward(img, params))

    assert logits.shape == (B, 2)
    assert jnp.allclose(logits, ref, atol=1e-3, rtol=1e-3), (logits, ref)

    print("KERNEL_OK")
</pallas_src>

<mosaic_0001>
module attributes {stable_mosaic.version = 11 : i64} {
  func.func @vlp_rsna_kernel(%arg0: i32, %arg1: i32, %arg2: memref<1x10x18x4xbf16, #tpu.memory_space<vmem>>, %arg3: memref<9x4x128xbf16, #tpu.memory_space<vmem>>, %arg4: memref<1x128xf32, #tpu.memory_space<vmem>>, %arg5: memref<128x2xf32, #tpu.memory_space<vmem>>, %arg6: memref<1x2xf32, #tpu.memory_space<vmem>>, %arg7: memref<1x1x2xf32, #tpu.memory_space<vmem>>, %arg8: memref<1x128xf32, #tpu.memory_space<vmem>>) attributes {dimension_semantics = [#tpu.dimension_semantics<parallel>, #tpu.dimension_semantics<arbitrary>], iteration_bounds = array<i64: 2, 2>, scalar_prefetch = 0 : i64, scratch_operands = 1 : i64, tpu.core_type = #tpu.core_type<tc>, window_params = [{transform_indices = @transform_0, window_bounds = array<i64: 1, 10, 18, 4>}, {pipeline_mode = #tpu.pipeline_mode<synchronous>, transform_indices = @transform_1, window_bounds = array<i64: 9, 4, 128>}, {pipeline_mode = #tpu.pipeline_mode<synchronous>, transform_indices = @transform_2, window_bounds = array<i64: 1, 128>}, {pipeline_mode = #tpu.pipeline_mode<synchronous>, transform_indices = @transform_3, window_bounds = array<i64: 128, 2>}, {pipeline_mode = #tpu.pipeline_mode<synchronous>, transform_indices = @transform_4, window_bounds = array<i64: 1, 2>}, {transform_indices = @transform_5, window_bounds = array<i64: 1, 1, 2>}]} {
    %c0_i32 = arith.constant 0 : i32
    %0 = arith.cmpi eq, %arg1, %c0_i32 : i32
    %1 = arith.extui %0 : i1 to i32
    %c0_i32_0 = arith.constant 0 : i32
    %2 = arith.cmpi ne, %1, %c0_i32_0 : i32
    scf.if %2 {
      %cst_72 = arith.constant 0.000000e+00 : f32
      %78 = vector.broadcast %cst_72 : f32 to vector<1x128xf32>
      %c0_73 = arith.constant 0 : index
      %c0_74 = arith.constant 0 : index
      %79 = vector.load %arg8[%c0_73, %c0_74] : memref<1x128xf32, #tpu.memory_space<vmem>>, vector<1x128xf32>
      tpu.vector_store %arg8[%c0_73, %c0_74], %78 {strides = array<i32>} : memref<1x128xf32, #tpu.memory_space<vmem>>, vector<1x128xf32>,
    } else {
    }
    %c0 = arith.constant 0 : index
    %c0_1 = arith.constant 0 : index
    %c0_2 = arith.constant 0 : index
    %c0_3 = arith.constant 0 : index
    %3 = vector.load %arg2[%c0, %c0_1, %c0_2, %c0_3] : memref<1x10x18x4xbf16, #tpu.memory_space<vmem>>, vector<1x8x16x4xbf16>
    %4 = vector.shape_cast %3 : vector<1x8x16x4xbf16> to vector<8x16x4xbf16>
    %5 = vector.shape_cast %4 : vector<8x16x4xbf16> to vector<128x4xbf16>
    %c0_4 = arith.constant 0 : index
    %c0_5 = arith.constant 0 : index
    %c0_6 = arith.constant 0 : index
    %6 = vector.load %arg3[%c0_4, %c0_5, %c0_6] : memref<9x4x128xbf16, #tpu.memory_space<vmem>>, vector<1x4x128xbf16>
    %7 = vector.shape_cast %6 : vector<1x4x128xbf16> to vector<4x128xbf16>
    %cst = arith.constant dense<0.000000e+00> : vector<128x128xf32>
    %8 = tpu.matmul %5, %7, %cst {dimension_numbers = #tpu.dot_dimension_numbers<[1], [0], [0], [1], [0, 0, 1, 1], [], []>} : vector<128x4xbf16>, vector<4x128xbf16>, vector<128x128xf32> -> vector<128x128xf32>
    %c0_7 = arith.constant 0 : index
    %c0_8 = arith.constant 0 : index
    %c1 = arith.constant 1 : index
    %c0_9 = arith.constant 0 : index
    %9 = vector.load %arg2[%c0_7, %c0_8, %c1, %c0_9] : memref<1x10x18x4xbf16, #tpu.memory_space<vmem>>, vector<1x8x16x4xbf16>
    %10 = vector.shape_cast %9 : vector<1x8x16x4xbf16> to vector<8x16x4xbf16>
    %11 = vector.shape_cast %10 : vector<8x16x4xbf16> to vector<128x4xbf16>
    %c1_10 = arith.constant 1 : index
    %c0_11 = arith.constant 0 : index
    %c0_12 = arith.constant 0 : index
    %12 = vector.load %arg3[%c1_10, %c0_11, %c0_12] : memref<9x4x128xbf16, #tpu.memory_space<vmem>>, vector<1x4x128xbf16>
    %13 = vector.shape_cast %12 : vector<1x4x128xbf16> to vector<4x128xbf16>
    %cst_13 = arith.constant dense<0.000000e+00> : vector<128x128xf32>
    %14 = tpu.matmul %11, %13, %cst_13 {dimension_numbers = #tpu.dot_dimension_numbers<[1], [0], [0], [1], [0, 0, 1, 1], [], []>} : vector<128x4xbf16>, vector<4x128xbf16>, vector<128x128xf32> -> vector<128x128xf32>
    %15 = arith.addf %8, %14 : vector<128x128xf32>
    %c0_14 = arith.constant 0 : index
    %c0_15 = arith.constant 0 : index
    %c2 = arith.constant 2 : index
    %c0_16 = arith.constant 0 : index
    %16 = vector.load %arg2[%c0_14, %c0_15, %c2, %c0_16] : memref<1x10x18x4xbf16, #tpu.memory_space<vmem>>, vector<1x8x16x4xbf16>
    %17 = vector.shape_cast %16 : vector<1x8x16x4xbf16> to vector<8x16x4xbf16>
    %18 = vector.shape_cast %17 : vector<8x16x4xbf16> to vector<128x4xbf16>
    %c2_17 = arith.constant 2 : index
    %c0_18 = arith.constant 0 : index
    %c0_19 = arith.constant 0 : index
    %19 = vector.load %arg3[%c2_17, %c0_18, %c0_19] : memref<9x4x128xbf16, #tpu.memory_space<vmem>>, vector<1x4x128xbf16>
    %20 = vector.shape_cast %19 : vector<1x4x128xbf16> to vector<4x128xbf16>
    %cst_20 = arith.constant dense<0.000000e+00> : vector<128x128xf32>
    %21 = tpu.matmul %18, %20, %cst_20 {dimension_numbers = #tpu.dot_dimension_numbers<[1], [0], [0], [1], [0, 0, 1, 1], [], []>} : vector<128x4xbf16>, vector<4x128xbf16>, vector<128x128xf32> -> vector<128x128xf32>
    %22 = arith.addf %15, %21 : vector<128x128xf32>
    %c0_21 = arith.constant 0 : index
    %c1_22 = arith.constant 1 : index
    %c0_23 = arith.constant 0 : index
    %c0_24 = arith.constant 0 : index
    %23 = vector.load %arg2[%c0_21, %c1_22, %c0_23, %c0_24] : memref<1x10x18x4xbf16, #tpu.memory_space<vmem>>, vector<1x8x16x4xbf16>
    %24 = vector.shape_cast %23 : vector<1x8x16x4xbf16> to vector<8x16x4xbf16>
    %25 = vector.shape_cast %24 : vector<8x16x4xbf16> to vector<128x4xbf16>
    %c3 = arith.constant 3 : index
    %c0_25 = arith.constant 0 : index
    %c0_26 = arith.constant 0 : index
    %26 = vector.load %arg3[%c3, %c0_25, %c0_26] : memref<9x4x128xbf16, #tpu.memory_space<vmem>>, vector<1x4x128xbf16>
    %27 = vector.shape_cast %26 : vector<1x4x128xbf16> to vector<4x128xbf16>
    %cst_27 = arith.constant dense<0.000000e+00> : vector<128x128xf32>
    %28 = tpu.matmul %25, %27, %cst_27 {dimension_numbers = #tpu.dot_dimension_numbers<[1], [0], [0], [1], [0, 0, 1, 1], [], []>} : vector<128x4xbf16>, vector<4x128xbf16>, vector<128x128xf32> -> vector<128x128xf32>
    %29 = arith.addf %22, %28 : vector<128x128xf32>
    %c0_28 = arith.constant 0 : index
    %c1_29 = arith.constant 1 : index
    %c1_30 = arith.constant 1 : index
    %c0_31 = arith.constant 0 : index
    %30 = vector.load %arg2[%c0_28, %c1_29, %c1_30, %c0_31] : memref<1x10x18x4xbf16, #tpu.memory_space<vmem>>, vector<1x8x16x4xbf16>
    %31 = vector.shape_cast %30 : vector<1x8x16x4xbf16> to vector<8x16x4xbf16>
    %32 = vector.shape_cast %31 : vector<8x16x4xbf16> to vector<128x4xbf16>
    %c4 = arith.constant 4 : index
    %c0_32 = arith.constant 0 : index
    %c0_33 = arith.constant 0 : index
    %33 = vector.load %arg3[%c4, %c0_32, %c0_33] : memref<9x4x128xbf16, #tpu.memory_space<vmem>>, vector<1x4x128xbf16>
    %34 = vector.shape_cast %33 : vector<1x4x128xbf16> to vector<4x128xbf16>
    %cst_34 = arith.constant dense<0.000000e+00> : vector<128x128xf32>
    %35 = tpu.matmul %32, %34, %cst_34 {dimension_numbers = #tpu.dot_dimension_numbers<[1], [0], [0], [1], [0, 0, 1, 1], [], []>} : vector<128x4xbf16>, vector<4x128xbf16>, vector<128x128xf32> -> vector<128x128xf32>
    %36 = arith.addf %29, %35 : vector<128x128xf32>
    %c0_35 = arith.constant 0 : index
    %c1_36 = arith.constant 1 : index
    %c2_37 = arith.constant 2 : index
    %c0_38 = arith.constant 0 : index
    %37 = vector.load %arg2[%c0_35, %c1_36, %c2_37, %c0_38] : memref<1x10x18x4xbf16, #tpu.memory_space<vmem>>, vector<1x8x16x4xbf16>
    %38 = vector.shape_cast %37 : vector<1x8x16x4xbf16> to vector<8x16x4xbf16>
    %39 = vector.shape_cast %38 : vector<8x16x4xbf16> to vector<128x4xbf16>
    %c5 = arith.constant 5 : index
    %c0_39 = arith.constant 0 : index
    %c0_40 = arith.constant 0 : index
    %40 = vector.load %arg3[%c5, %c0_39, %c0_40] : memref<9x4x128xbf16, #tpu.memory_space<vmem>>, vector<1x4x128xbf16>
    %41 = vector.shape_cast %40 : vector<1x4x128xbf16> to vector<4x128xbf16>
    %cst_41 = arith.constant dense<0.000000e+00> : vector<128x128xf32>
    %42 = tpu.matmul %39, %41, %cst_41 {dimension_numbers = #tpu.dot_dimension_numbers<[1], [0], [0], [1], [0, 0, 1, 1], [], []>} : vector<128x4xbf16>, vector<4x128xbf16>, vector<128x128xf32> -> vector<128x128xf32>
    %43 = arith.addf %36, %42 : vector<128x128xf32>
    %c0_42 = arith.constant 0 : index
    %c2_43 = arith.constant 2 : index
    %c0_44 = arith.constant 0 : index
    %c0_45 = arith.constant 0 : index
    %44 = vector.load %arg2[%c0_42, %c2_43, %c0_44, %c0_45] : memref<1x10x18x4xbf16, #tpu.memory_space<vmem>>, vector<1x8x16x4xbf16>
    %45 = vector.shape_cast %44 : vector<1x8x16x4xbf16> to vector<8x16x4xbf16>
    %46 = vector.shape_cast %45 : vector<8x16x4xbf16> to vector<128x4xbf16>
    %c6 = arith.constant 6 : index
    %c0_46 = arith.constant 0 : index
    %c0_47 = arith.constant 0 : index
    %47 = vector.load %arg3[%c6, %c0_46, %c0_47] : memref<9x4x128xbf16, #tpu.memory_space<vmem>>, vector<1x4x128xbf16>
    %48 = vector.shape_cast %47 : vector<1x4x128xbf16> to vector<4x128xbf16>
    %cst_48 = arith.constant dense<0.000000e+00> : vector<128x128xf32>
    %49 = tpu.matmul %46, %48, %cst_48 {dimension_numbers = #tpu.dot_dimension_numbers<[1], [0], [0], [1], [0, 0, 1, 1], [], []>} : vector<128x4xbf16>, vector<4x128xbf16>, vector<128x128xf32> -> vector<128x128xf32>
    %50 = arith.addf %43, %49 : vector<128x128xf32>
    %c0_49 = arith.constant 0 : index
    %c2_50 = arith.constant 2 : index
    %c1_51 = arith.constant 1 : index
    %c0_52 = arith.constant 0 : index
    %51 = vector.load %arg2[%c0_49, %c2_50, %c1_51, %c0_52] : memref<1x10x18x4xbf16, #tpu.memory_space<vmem>>, vector<1x8x16x4xbf16>
    %52 = vector.shape_cast %51 : vector<1x8x16x4xbf16> to vector<8x16x4xbf16>
    %53 = vector.shape_cast %52 : vector<8x16x4xbf16> to vector<128x4xbf16>
    %c7 = arith.constant 7 : index
    %c0_53 = arith.constant 0 : index
    %c0_54 = arith.constant 0 : index
    %54 = vector.load %arg3[%c7, %c0_53, %c0_54] : memref<9x4x128xbf16, #tpu.memory_space<vmem>>, vector<1x4x128xbf16>
    %55 = vector.shape_cast %54 : vector<1x4x128xbf16> to vector<4x128xbf16>
    %cst_55 = arith.constant dense<0.000000e+00> : vector<128x128xf32>
    %56 = tpu.matmul %53, %55, %cst_55 {dimension_numbers = #tpu.dot_dimension_numbers<[1], [0], [0], [1], [0, 0, 1, 1], [], []>} : vector<128x4xbf16>, vector<4x128xbf16>, vector<128x128xf32> -> vector<128x128xf32>
    %57 = arith.addf %50, %56 : vector<128x128xf32>
    %c0_56 = arith.constant 0 : index
    %c2_57 = arith.constant 2 : index
    %c2_58 = arith.constant 2 : index
    %c0_59 = arith.constant 0 : index
    %58 = vector.load %arg2[%c0_56, %c2_57, %c2_58, %c0_59] : memref<1x10x18x4xbf16, #tpu.memory_space<vmem>>, vector<1x8x16x4xbf16>
    %59 = vector.shape_cast %58 : vector<1x8x16x4xbf16> to vector<8x16x4xbf16>
    %60 = vector.shape_cast %59 : vector<8x16x4xbf16> to vector<128x4xbf16>
    %c8 = arith.constant 8 : index
    %c0_60 = arith.constant 0 : index
    %c0_61 = arith.constant 0 : index
    %61 = vector.load %arg3[%c8, %c0_60, %c0_61] : memref<9x4x128xbf16, #tpu.memory_space<vmem>>, vector<1x4x128xbf16>
    %62 = vector.shape_cast %61 : vector<1x4x128xbf16> to vector<4x128xbf16>
    %cst_62 = arith.constant dense<0.000000e+00> : vector<128x128xf32>
    %63 = tpu.matmul %60, %62, %cst_62 {dimension_numbers = #tpu.dot_dimension_numbers<[1], [0], [0], [1], [0, 0, 1, 1], [], []>} : vector<128x4xbf16>, vector<4x128xbf16>, vector<128x128xf32> -> vector<128x128xf32>
    %64 = arith.addf %57, %63 : vector<128x128xf32>
    %c0_63 = arith.constant 0 : index
    %c0_64 = arith.constant 0 : index
    %65 = vector.load %arg4[%c0_63, %c0_64] : memref<1x128xf32, #tpu.memory_space<vmem>>, vector<1x128xf32>
    %66 = vector.broadcast %65 : vector<1x128xf32> to vector<128x128xf32>
    %67 = arith.addf %64, %66 : vector<128x128xf32>
    %cst_65 = arith.constant 0.000000e+00 : f32
    %68 = vector.broadcast %cst_65 : f32 to vector<128x128xf32>
    %69 = arith.maximumf %67, %68 : vector<128x128xf32>
    %c0_66 = arith.constant 0 : index
    %c0_67 = arith.constant 0 : index
    %70 = vector.load %arg8[%c0_66, %c0_67] : memref<1x128xf32, #tpu.memory_space<vmem>>, vector<1x128xf32>
    %cst_68 = arith.constant dense<0.000000e+00> : vector<128xf32>
    %71 = vector.multi_reduction <add>, %69, %cst_68 [0] : vector<128x128xf32> to vector<128xf32>
    %72 = vector.shape_cast %71 : vector<128xf32> to vector<1x128xf32>
    %73 = arith.addf %70, %72 : vector<1x128xf32>
    %c0_69 = arith.constant 0 : index
    %c0_70 = arith.constant 0 : index
    %74 = vector.load %arg8[%c0_69, %c0_70] : memref<1x128xf32, #tpu.memory_space<vmem>>, vector<1x128xf32>
    tpu.vector_store %arg8[%c0_69, %c0_70], %73 {strides = array<i32>} : memref<1x128xf32, #tpu.memory_space<vmem>>, vector<1x128xf32>,
    %c1_i32 = arith.constant 1 : i32
    %75 = arith.cmpi eq, %arg1, %c1_i32 : i32
    %76 = arith.extui %75 : i1 to i32
    %c0_i32_71 = arith.constant 0 : i32
    %77 = arith.cmpi ne, %76, %c0_i32_71 : i32
    scf.if %77 {
      %c0_72 = arith.constant 0 : index
      %c0_73 = arith.constant 0 : index
      %78 = vector.load %arg8[%c0_72, %c0_73] : memref<1x128xf32, #tpu.memory_space<vmem>>, vector<1x128xf32>
      %c0_74 = arith.constant 0 : index
      %c0_75 = arith.constant 0 : index
      %79 = vector.load %arg5[%c0_74, %c0_75] : memref<128x2xf32, #tpu.memory_space<vmem>>, vector<128x2xf32>
      %cst_76 = arith.constant dense<0.000000e+00> : vector<1x2xf32>
      %80 = tpu.matmul %78, %79, %cst_76 {dimension_numbers = #tpu.dot_dimension_numbers<[1], [0], [0], [1], [0, 0, 1, 1], [], []>} : vector<1x128xf32>, vector<128x2xf32>, vector<1x2xf32> -> vector<1x2xf32>
      %c0_77 = arith.constant 0 : index
      %c0_78 = arith.constant 0 : index
      %81 = vector.load %arg6[%c0_77, %c0_78] : memref<1x2xf32, #tpu.memory_space<vmem>>, vector<1x2xf32>
      %82 = arith.addf %80, %81 : vector<1x2xf32>
      %c0_79 = arith.constant 0 : index
      %c0_80 = arith.constant 0 : index
      %c0_81 = arith.constant 0 : index
      %83 = vector.load %arg7[%c0_79, %c0_80, %c0_81] : memref<1x1x2xf32, #tpu.memory_space<vmem>>, vector<1x1x2xf32>
      %84 = vector.shape_cast %83 : vector<1x1x2xf32> to vector<1x2xf32>
      %85 = vector.shape_cast %82 : vector<1x2xf32> to vector<1x1x2xf32>
      tpu.vector_store %arg7[%c0_79, %c0_80, %c0_81], %85 {strides = array<i32>} : memref<1x1x2xf32, #tpu.memory_space<vmem>>, vector<1x1x2xf32>,
    } else {
    }
    return
  }
  func.func @transform_0(%arg0: i32, %arg1: i32) -> (i32, i32, i32, i32) {
    %c2_i32 = arith.constant 2 : i32
    %0 = arith.muli %arg0, %c2_i32 : i32
    %1 = arith.addi %0, %arg1 : i32
    %c0_i32 = arith.constant 0 : i32
    %c0_i32_0 = arith.constant 0 : i32
    %c0_i32_1 = arith.constant 0 : i32
    %c0_i32_2 = arith.constant 0 : i32
    return %1, %c0_i32, %c0_i32_0, %c0_i32_1 : i32, i32, i32, i32
  }
  func.func @transform_1(%arg0: i32, %arg1: i32) -> (i32, i32, i32) {
    %c0_i32 = arith.constant 0 : i32
    %c0_i32_0 = arith.constant 0 : i32
    %c0_i32_1 = arith.constant 0 : i32
    %c0_i32_2 = arith.constant 0 : i32
    return %c0_i32, %c0_i32_0, %c0_i32_1 : i32, i32, i32
  }
  func.func @transform_2(%arg0: i32, %arg1: i32) -> (i32, i32) {
    %c0_i32 = arith.constant 0 : i32
    %c0_i32_0 = arith.constant 0 : i32
    %c0_i32_1 = arith.constant 0 : i32
    return %c0_i32, %c0_i32_0 : i32, i32
  }
  func.func @transform_3(%arg0: i32, %arg1: i32) -> (i32, i32) {
    %c0_i32 = arith.constant 0 : i32
    %c0_i32_0 = arith.constant 0 : i32
    %c0_i32_1 = arith.constant 0 : i32
    return %c0_i32, %c0_i32_0 : i32, i32
  }
  func.func @transform_4(%arg0: i32, %arg1: i32) -> (i32, i32) {
    %c0_i32 = arith.constant 0 : i32
    %c0_i32_0 = arith.constant 0 : i32
    %c0_i32_1 = arith.constant 0 : i32
    return %c0_i32, %c0_i32_0 : i32, i32
  }
  func.func @transform_5(%arg0: i32, %arg1: i32) -> (i32, i32, i32) {
    %c0_i32 = arith.constant 0 : i32
    %c0_i32_0 = arith.constant 0 : i32
    %c0_i32_1 = arith.constant 0 : i32
    return %arg0, %c0_i32, %c0_i32_0 : i32, i32, i32
  }
}

</mosaic_0001>

<bundles_post_ra>
// kernel: vlp_rsna_forward.1
= control target key start
LH: loop header
LB: loop body
LE: loop exit
PB: predicated region body
PF: predicated region fallthrough
CT: control target
= control target key end

     0   :  { %10 = vsyncpa [#allocation4], 0  ;;  %s3931_s0 = inlined_call_operand.vmem [shape: bf16[4,10,18,4], index: 0, kind: input, shape index: {}]   ;;  %s3932_s1 = inlined_call_operand.vmem [shape: bf16[9,4,128], index: 1, kind: input, shape index: {}]   ;;  %s3933_s2 = inlined_call_operand.vmem [shape: f32[1,128], index: 2, kind: input, shape index: {}]   ;;  %s3934_s3 = inlined_call_operand.vmem [shape: f32[128,2], index: 3, kind: input, shape index: {}]   ;;  %s3935_s4 = inlined_call_operand.vmem [shape: f32[1,2], index: 4, kind: input, shape index: {}]   ;;  %s3936_s5 = inlined_call_operand.hbm [shape: f32[2,1,2], index: 5, kind: output, shape index: {}]  }
   0x1   :  { %12 = vsyncpa [#allocation4 + $0x1], 0  ;;  %s2997_s18 = smov 0   ;;  %s2999_s19 = smov 0  }
   0x2   :  { %s3001_s20 = smov 0   ;;  %s3003_s21 = smov 0  }
   0x3   :  { %s3005_s22 = smov 0   ;;  %s3007_s23 = smov 0  }
   0x4   :  { %s3009_s24 = smov 0   ;;  %s3011_s25 = smov 0  }
   0x5 LB: > { %s2460_s26 = sadd.s32 4294967295, %s2964_s25   ;;  %s2461_s27 = sadd.s32 4294967294, %s2964_s25   ;;  %s2964_s25 = sphi %s3011_s25, %s18_s25   ;;  %s2960_s24 = sphi %s3009_s24, %s3949_s24   ;;  %s2956_s23 = sphi %s3007_s23, %s3948_s23   ;;  %s2952_s22 = sphi %s3005_s22, %s3947_s22   ;;  %s2948_s21 = sphi %s3003_s21, %s3946_s21   ;;  %s2944_s20 = sphi %s3001_s20, %s3945_s20   ;;  %s2940_s19 = sphi %s2999_s19, %s3944_s19   ;;  %s2936_s18 = sphi %s2997_s18, %s3943_s18  }
   0x6   : > { %s27_s28 = sadd.s32 1, %s2956_s23  ;;  %s30_s29 = sadd.s32 1, %s2960_s24 }
   0x7   : > { %p28_p0 = scmp.ge.s32.totalorder %s27_s28, 2  ;;  %p161_p1 = scmp.ne.s32.totalorder %s2944_s20, %s2940_s19 }
   0x8   : > { %p162_p2 = scmp.eq.s32.totalorder %s2460_s26, 3  ;;  %p167_p4 = scmp.ne.s32.totalorder %s2940_s19, %s2936_s18 }
   0x9   : > { %s3951_s28 = smov (%p28_p0, %s27_s28), 0  ;;  %s3953_s29 = smov (!%p28_p0, %s30_s29), %s2960_s24 }
   0xa   : > { %p3046_p3 = por %p162_p2, %p161_p1  ;;  %p32_p5 = scmp.ge.s32.totalorder %s3953_s29, 2 }
   0xb   : > { %p168_p6 = scmp.eq.s32.totalorder %s2461_s27, 3  ;;  %p2466_p7 = scmp.ge.s32.totalorder %s2964_s25, 1 }
   0xc   : > { %p210_p8 = scmp.lt.s32.totalorder %s2964_s25, 5  ;;  %s3955_s29 = smov (%p32_p5, %s3953_s29), 0 }
   0xd   : > { %p3056_p9 = por %p168_p6, %p167_p4  ;;  %s148_s7 = ssub.s32 %s2960_s24, %s3955_s29 }
   0xe   : > { %p211_p10 = pnand %p2466_p7, %p210_p8  ;;  %s151_s8 = sadd.s32 1, %s2944_s20 }
   0xf   : > { %p149_p11 = scmp.eq.s32.totalorder %s148_s7, 0  ;;  %s237_s10 = sand.u32 (!%p211_p10), 1, %s2940_s19  }
  0x10   : > { %214 = sbr.rel (%p211_p10) target bundleno = 668 (0x29c), region = 40  ;;  %s2467_s11 = sshll.u32 (!%p211_p10), %s2952_s22, 1 }
  0x11   : > { %s3064_s9 = scalar_select %p149_p11, %s2944_s20, %s151_s8  }
  0x12   : > { %s240_s12 = sadd.s32 (!%p211_p10), %s2948_s21, %s2467_s11  ;;  %s3076_s17 = scalar_lea.vmem (!%p211_p10), [#allocation3], %s237_s10 }
  0x13   : > { %p241_p12 = scmp.lt.s32.totalorder (!%p211_p10), %s240_s12, 3  ;;  %p2469_p13 = scmp.ne.s32.totalorder (!%p211_p10), %s2948_s21, 0 }
  0x15   : > { %s3957_s12 = smov (!%p241_p12, %s240_s12), 3  ;;  %252 = sbr.rel (%p2469_p13) target bundleno = 28 (0x1c), region = 44 }
  0x16   : > { %s2796_s13 = smul.u32 120, %s3957_s12 }
  0x18   : > { %s3072_s16 = scalar_lea.vmem %s3931_s0, %s2796_s13 }
  0x1a   : > { %v2966_v0 = vmov 0.0  }
  0x1b   : > { %253 = vst [vmem:[#allocation2] sm:$0x1] %v2966_v0 }
  0x1c PF: > { %v2470_v1 = vld [vmem:[%s3932_s1 + $0x2] sm:$0x3]  ;;  %vm525_vm0 = vcmask 1041408   ;;  %v258_v2 = vld [vmem:[%s3072_s16 + $0x18] sm:$0xf]  ;;  %vm500_vm3 = vcmask 31744  }
  0x1d   : > { %v527_v3 = vsel %vm525_vm0, %v2470_v1, 0  ;;  %v3085_v4 = vld [vmem:[%s3072_s16 + $0x1c] sm:$0xf]  ;;  %v3088_v5 = vld [vmem:[%s3072_s16 + $0x20] sm:$0x1]  ;;  %v331_v6 = vshrl.u32 %v258_v2, 16 }
  0x1e   : > { %2793 = vmatpush.bf16.msra.mxu1 %v527_v3  ;;  %2794 = vmatpush.bf16.msra.mxu2 %v527_v3  ;;  %vm279_vm1 = vsmask.f32 3328  ;;  %vm280_vm2 = vsmask.f32 7440  ;;  %v334_v7 = vshll.u32 %v258_v2, 16  ;;  %v340_v8 = vshll.u32 %v3085_v4, 16 }
  0x1f   : > { %2795 = vmatpush.bf16.msra.mxu3 %v527_v3  ;;  %536 = vmatpush.bf16.msra.mxu0 %v527_v3  ;;  %v333_v9 = vrot.slane %v331_v6, 4  ;;  %v344_v10 = vshrl.u32 %v3085_v4, 16  ;;  %v350_v11 = vshll.u32 %v3088_v5, 16  ;;  %v262_v12 = vld [vmem:[%s3072_s16 + $0x30] sm:$0xf]  ;;  %vm3106_vm4 = vmor %vm279_vm1, %vm280_vm2  ;;  %vm718_vm5 = vcmask 1042432  }
  0x20   : > { %v336_v13 = vrot.slane %v334_v7, 5  ;;  %v342_v14 = vrot.slane %v340_v8, 5  ;;  %v3095_v15 = vld [vmem:[%s3072_s16 + $0x34] sm:$0xf]  ;;  %v3098_v16 = vld [vmem:[%s3072_s16 + $0x38] sm:$0x1] }
  0x21   : > { %v346_v17 = vrot.slane %v344_v10, 4  ;;  %v352_v18 = vrot.slane %v350_v11, 5  ;;  %v379_v19 = vshrl.u32 %v262_v12, 16  ;;  %v382_v20 = vshll.u32 %v262_v12, 16  ;;  %v266_v21 = vld [vmem:[%s3072_s16 + $0x48] sm:$0xf] }
  0x22   : > { %v337_v22 = vor.u32 %v336_v13, %v333_v9  ;;  %v388_v23 = vshll.u32 %v3095_v15, 16  ;;  %v392_v24 = vshrl.u32 %v3095_v15, 16  ;;  %v398_v25 = vshll.u32 %v3098_v16, 16  ;;  %v3111_v30 = vld [vmem:[%s3072_s16 + $0x4c] sm:$0xf]  ;;  %p2766_p0 = scmp.ne.s32.totalorder %s2948_s21, 1 }
  0x23   : > { %v347_v27 = vor.u32 %v346_v17, %v342_v14  ;;  %v381_v28 = vrot.slane %v379_v19, 4  ;;  %v384_v29 = vrot.slane %v382_v20, 5  ;;  %v427_v31 = vshrl.u32 %v266_v21, 16  ;;  %v3116_v42 = vld [vmem:[%s3072_s16 + $0x50] sm:$0x1] }
  0x24   : > { %v338_v32 = vrot.slane %v337_v22, 4  ;;  %v390_v33 = vrot.slane %v388_v23, 5  ;;  %v394_v34 = vrot.slane %v392_v24, 4  ;;  %v400_v35 = vrot.slane %v398_v25, 5  ;;  %v2527_v45 = vld [vmem:[%s3932_s1 + $0x4] sm:$0x3] }
  0x25   : > { %v348_v36 = vrot.slane %v347_v27, 4  ;;  %v385_v37 = vor.u32 %v384_v29, %v381_v28  ;;  %v429_v38 = vrot.slane %v427_v31, 4  ;;  %v430_v39 = vshll.u32 %v266_v21, 16  ;;  %v254_v54 = vld [vmem:[%s3072_s16] sm:$0xf] }
  0x26   : > { %v343_v40 = vsel %vm3106_vm4, %v338_v32, %v342_v14  ;;  %v395_v41 = vor.u32 %v394_v34, %v390_v33  ;;  %v436_v43 = vshll.u32 %v3111_v30, 16  ;;  %v440_v44 = vshrl.u32 %v3111_v30, 16  ;;  %v3131_v59 = vld [vmem:[%s3072_s16 + $0x4] sm:$0xf]  ;;  %v3136_v0 = vld [vmem:[%s3072_s16 + $0x8] sm:$0x1] }
  0x27   : > { %v353_v46 = vsel %vm3106_vm4, %v348_v36, %v352_v18  ;;  %v480_v47 = vunpack.c.l.b16 %v343_v40  ;;  %v386_v48 = vrot.slane %v385_v37, 4  ;;  %v432_v49 = vrot.slane %v430_v39, 5  ;;  %v2552_v11 = vld [vmem:[%s3932_s1 + $0x6] sm:$0x3]  ;;  %v270_v18 = vld [vmem:[%s3932_s1] sm:$0x3] }
  0x28   : > { %v481_v50 = vunpack.c.l.b16 %v353_v46  ;;  %v396_v51 = vrot.slane %v395_v41, 4  ;;  %v438_v52 = vrot.slane %v436_v43, 5  ;;  %v442_v53 = vrot.slane %v440_v44, 4  ;;  %v2617_v19 = vld [vmem:[%s3932_s1 + $0x8] sm:$0x3] }
  0x29   : > { %v391_v55 = vsel %vm3106_vm4, %v386_v48, %v390_v33  ;;  %v433_v56 = vor.u32 %v432_v49, %v429_v38  ;;  %v446_v57 = vshll.u32 %v3116_v42, 16  ;;  %v828_v58 = vsel %vm525_vm0, %v2527_v45, 0  ;;  %v260_v24 = vld [vmem:[%s3072_s16 + $0x24] sm:$0xf]  ;;  %v3157_v25 = vld [vmem:[%s3072_s16 + $0x28] sm:$0xf] }
  0x2a   : > { %v494_v60 = vpack.c.b16 %v481_v50, %v480_v47  ;;  %v401_v61 = vsel %vm3106_vm4, %v396_v51, %v400_v35  ;;  %v484_v62 = vunpack.c.l.b16 %v391_v55  ;;  %v443_v63 = vor.u32 %v442_v53, %v438_v52  ;;  %837 = vmatpush.bf16.msrb.mxu2 %v828_v58  ;;  %v3162_v32 = vld [vmem:[%s3072_s16 + $0x2c] sm:$0x1]  ;;  %v264_v37 = vld [vmem:[%s3072_s16 + $0x3c] sm:$0xf]  ;;  %v3169_v43 = vld [vmem:[%s3072_s16 + $0x40] sm:$0xf] }
  0x2b   : > { %v485_v1 = vunpack.c.l.b16 %v401_v61  ;;  %v434_v2 = vrot.slane %v433_v56, 4  ;;  %v448_v3 = vrot.slane %v446_v57, 5  ;;  %v283_v6 = vshrl.u32 %v254_v54, 16  ;;  %v3176_v51 = vld [vmem:[%s3072_s16 + $0x44] sm:$0x1] }
  0x2c   : > { %2473 = vmatmul.msk.bf16.vlgmr.msra.gmra.mxu1 %vm500_vm3, %v494_v60  ;;  %v444_v7 = vrot.slane %v443_v63, 4  ;;  %v286_v8 = vshll.u32 %v254_v54, 16  ;;  %v292_v9 = vshll.u32 %v3131_v59, 16  ;;  %v296_v10 = vshrl.u32 %v3131_v59, 16  ;;  %v268_v57 = vld [vmem:[%s3072_s16 + $0x54] sm:$0xf] }
  0x2d   : > { %v496_v12 = vpack.c.b16 %v485_v1, %v484_v62  ;;  %v439_v13 = vsel %vm3106_vm4, %v434_v2, %v438_v52  ;;  %v285_v14 = vrot.slane %v283_v6, 4  ;;  %v302_v17 = vshll.u32 %v3136_v0, 16 }
  0x2e   : > { %v449_v20 = vsel %vm3106_vm4, %v444_v7, %v448_v3  ;;  %v488_v21 = vunpack.c.l.b16 %v439_v13  ;;  %v288_v22 = vrot.slane %v286_v8, 5  ;;  %v294_v23 = vrot.slane %v292_v9, 5  ;;  %v3187_v9 = vld [vmem:[%s3072_s16 + $0x58] sm:$0xf] }
  0x2f   : > { %2475 = vmatmul.msk.bf16.vlgmr.msra.gmra.mxu2 %vm500_vm3, %v496_v12  ;;  %v489_v27 = vunpack.c.l.b16 %v449_v20  ;;  %v298_v28 = vrot.slane %v296_v10, 4  ;;  %v304_v29 = vrot.slane %v302_v17, 5  ;;  %v726_v31 = vrot.slane %v3136_v0, 5  ;;  %v3190_v17 = vld [vmem:[%s3072_s16 + $0x5c] sm:$0x1] }
  0x30   : > { %v289_v33 = vor.u32 %v288_v22, %v285_v14  ;;  %v979_v34 = vsel %vm525_vm0, %v2552_v11, 0  ;;  %v643_v35 = vsel %vm525_vm0, %v270_v18, 0  ;;  %v1313_v36 = vsel %vm525_vm0, %v2617_v19, 0  ;;  %v256_v22 = vld [vmem:[%s3072_s16 + $0xc] sm:$0xf] }
  0x31   : > { %v498_v38 = vpack.c.b16 %v489_v27, %v488_v21  ;;  %v299_v39 = vor.u32 %v298_v28, %v294_v23  ;;  %988 = vmatpush.bf16.msrb.mxu3 %v979_v34  ;;  %652 = vmatpush.bf16.msrb.mxu1 %v643_v35  ;;  %v355_v40 = vshrl.u32 %v260_v24, 16  ;;  %v358_v41 = vshll.u32 %v260_v24, 16 }
  0x32   : > { %v290_v44 = vrot.slane %v289_v33, 4  ;;  %1322 = vmatpush.bf16.msrb.mxu0 %v1313_v36  ;;  %v364_v45 = vshll.u32 %v3157_v25, 16  ;;  %v368_v46 = vshrl.u32 %v3157_v25, 16  ;;  %v374_v47 = vshll.u32 %v3162_v32, 16 }
  0x33   : > { %2477 = vmatmul.msk.bf16.vlgmr.msra.gmra.mxu3 %vm500_vm3, %v498_v38  ;;  %v300_v48 = vrot.slane %v299_v39, 4  ;;  %v357_v49 = vrot.slane %v355_v40, 4  ;;  %v360_v50 = vrot.slane %v358_v41, 5  ;;  %v403_v52 = vshrl.u32 %v264_v37, 16 }
  0x34   : > { %v295_v53 = vsel %vm3106_vm4, %v290_v44, %v294_v23  ;;  %v366_v54 = vrot.slane %v364_v45, 5  ;;  %v370_v55 = vrot.slane %v368_v46, 4  ;;  %v376_v56 = vrot.slane %v374_v47, 5  ;;  %v3202_v46 = vld [vmem:[%s3072_s16 + $0x10] sm:$0xf] }
  0x35   : > { %v305_v58 = vsel %vm3106_vm4, %v300_v48, %v304_v29  ;;  %v476_v60 = vunpack.c.l.b16 %v295_v53  ;;  %v361_v61 = vor.u32 %v360_v50, %v357_v49  ;;  %v405_v62 = vrot.slane %v403_v52, 4  ;;  %v3207_v50 = vld [vmem:[%s3072_s16 + $0x14] sm:$0x1] }
  0x36   : > { %v477_v63 = vunpack.c.l.b16 %v305_v58  ;;  %v371_v1 = vor.u32 %v370_v55, %v366_v54  ;;  %v406_v2 = vshll.u32 %v264_v37, 16  ;;  %v412_v3 = vshll.u32 %v3169_v43, 16 }
  0x37   : > { %v362_v6 = vrot.slane %v361_v61, 4  ;;  %v416_v7 = vshrl.u32 %v3169_v43, 16  ;;  %v422_v8 = vshll.u32 %v3176_v51, 16  ;;  %v451_v10 = vshrl.u32 %v268_v57, 16 }
  0x38   : > { %v492_v11 = vpack.c.b16 %v477_v63, %v476_v60  ;;  %v372_v12 = vrot.slane %v371_v1, 4  ;;  %v408_v13 = vrot.slane %v406_v2, 5  ;;  %v414_v14 = vrot.slane %v412_v3, 5  ;;  %v694_v2 = vld [vmem:[%s3072_s16] sm:$0xe] }
  0x39   : > { %v367_v18 = vsel %vm3106_vm4, %v362_v6, %v366_v54  ;;  %v418_v19 = vrot.slane %v416_v7, 4  ;;  %v424_v20 = vrot.slane %v422_v8, 5  ;;  %v453_v21 = vrot.slane %v451_v10, 4  ;;  %v2667_v10 = vld [vmem:[%s3932_s1 + $0xc] sm:$0x3] }
  0x3a   : > { %2471 = vmatmul.msk.bf16.vlgmr.msra.gmra.mxu0 %vm500_vm3, %v492_v11  ;;  %v377_v23 = vsel %vm3106_vm4, %v372_v12, %v376_v56  ;;  %v482_v24 = vunpack.c.l.b16 %v367_v18  ;;  %v409_v27 = vor.u32 %v408_v13, %v405_v62  ;;  %v454_v28 = vshll.u32 %v268_v57, 16  ;;  %v2593_v11 = vld [vmem:[%s3072_s16 + $0xc] sm:$0xf] }
  0x3b   : > { %v483_v29 = vunpack.c.l.b16 %v377_v23  ;;  %v419_v33 = vor.u32 %v418_v19, %v414_v14  ;;  %v460_v34 = vshll.u32 %v3187_v9, 16  ;;  %v464_v35 = vshrl.u32 %v3187_v9, 16  ;;  %v3225_v19 = vld [vmem:[%s3072_s16 + $0x10] sm:$0xf] }
  0x3c   : > { %v410_v36 = vrot.slane %v409_v27, 4  ;;  %v456_v37 = vrot.slane %v454_v28, 5  ;;  %v470_v38 = vshll.u32 %v3190_v17, 16  ;;  %v307_v39 = vshrl.u32 %v256_v22, 16 }
  0x3d   : > { %v495_v40 = vpack.c.b16 %v483_v29, %v482_v24  ;;  %v420_v41 = vrot.slane %v419_v33, 4  ;;  %v462_v44 = vrot.slane %v460_v34, 5  ;;  %v466_v45 = vrot.slane %v464_v35, 4 }
  0x3e   : > { %v415_v47 = vsel %vm3106_vm4, %v410_v36, %v414_v14  ;;  %v457_v48 = vor.u32 %v456_v37, %v453_v21  ;;  %v472_v49 = vrot.slane %v470_v38, 5  ;;  %v309_v52 = vrot.slane %v307_v39, 4  ;;  %v3239_v39 = vld [vmem:[%s3072_s16 + $0x14] sm:$0x1] }
  0x3f   : > { %2474 = vmatmul.msk.bf16.gmra.mxu1 %vm500_vm3, %v495_v40  ;;  %v425_v53 = vsel %vm3106_vm4, %v420_v41, %v424_v20  ;;  %v486_v54 = vunpack.c.l.b16 %v415_v47  ;;  %v467_v55 = vor.u32 %v466_v45, %v462_v44  ;;  %v310_v56 = vshll.u32 %v256_v22, 16  ;;  %v2732_v47 = vld [vmem:[%s3932_s1 + $0xe] sm:$0x3] }
  0x40   : > { %v487_v57 = vunpack.c.l.b16 %v425_v53  ;;  %v458_v58 = vrot.slane %v457_v48, 4  ;;  %v316_v60 = vshll.u32 %v3202_v46, 16  ;;  %v320_v61 = vshrl.u32 %v3202_v46, 16  ;;  %v2642_v48 = vld [vmem:[%s3932_s1 + $0xa] sm:$0x3] }
  0x41   : > { %v468_v62 = vrot.slane %v467_v55, 4  ;;  %v312_v63 = vrot.slane %v310_v56, 5  ;;  %v326_v1 = vshll.u32 %v3207_v50, 16  ;;  %vm719_vm6 = vcmask 1046532   ;;  %v2757_v55 = vld [vmem:[%s3932_s1 + $0x10] sm:$0x3] }
  0x42   : > { %v497_v3 = vpack.c.b16 %v487_v57, %v486_v54  ;;  %v463_v6 = vsel %vm3106_vm4, %v458_v58, %v462_v44  ;;  %v318_v7 = vrot.slane %v316_v60, 5  ;;  %v322_v8 = vrot.slane %v320_v61, 4  ;;  %vm3229_vm7 = vmor %vm718_vm5, %vm719_vm6  ;;  %v2769_v60 = vld [vmem:[%s3072_s16] sm:$0xff] }
  0x43   : > { %v473_v12 = vsel %vm3106_vm4, %v468_v62, %v472_v49  ;;  %v490_v13 = vunpack.c.l.b16 %v463_v6  ;;  %v313_v14 = vor.u32 %v312_v63, %v309_v52  ;;  %v328_v18 = vrot.slane %v326_v1, 5 }
  0x44   : > { %2476 = vmatmul.msk.bf16.gmra.mxu2 %vm500_vm3, %v497_v3  ;;  %v491_v20 = vunpack.c.l.b16 %v473_v12  ;;  %v323_v21 = vor.u32 %v322_v8, %v318_v7  ;;  %v2519_v22 = vrot.slane %v694_v2, 9  ;;  %v723_v27 = vrot.slane %v3131_v59, 5 }
  0x45   : > { %v314_v23 = vrot.slane %v313_v14, 4  ;;  %v1670_v28 = vsel %vm525_vm0, %v2667_v10, 0  ;;  %v1071_v29 = vshrl.u32 %v2593_v11, 16  ;;  %v1074_v35 = vshll.u32 %v2593_v11, 16  ;;  %v3269_v10 = vld [vmem:[%s3072_s16 + $0x1c] sm:$0xf] }
  0x46   : > { %v499_v33 = vpack.c.b16 %v491_v20, %v490_v13  ;;  %v324_v34 = vrot.slane %v323_v21, 4  ;;  %1679 = vmatpush.bf16.msra.mxu2 %v1670_v28  ;;  %v1080_v36 = vshll.u32 %v3225_v19, 16  ;;  %v725_v38 = vrot.slane %v723_v27, 4  ;;  %v696_v11 = vld [vmem:[%s3072_s16 + $0x18] sm:$0xe] }
  0x47   : > { %v319_v37 = vsel %vm3106_vm4, %v314_v23, %v318_v7  ;;  %v1073_v40 = vrot.slane %v1071_v29, 4  ;;  %v724_v44 = vsel %vm3229_vm7, %v2519_v22, %v723_v27  ;;  %v1076_v45 = vrot.slane %v1074_v35, 5  ;;  %v2596_v7 = vld [vmem:[%s3072_s16 + $0x18] sm:$0xf] }
  0x48   : > { %2478 = vmatmul.msk.bf16.gmra.mxu3 %vm500_vm3, %v499_v33  ;;  %v329_v59 = vsel %vm3106_vm4, %v324_v34, %v328_v18  ;;  %v478_v41 = vunpack.c.l.b16 %v319_v37  ;;  %v727_v52 = vsel %vm3229_vm7, %v725_v38, %v726_v31  ;;  %v1082_v53 = vrot.slane %v1080_v36, 5  ;;  %v695_v18 = vld [vmem:[%s3072_s16 + $0xc] sm:$0xe] }
  0x49   : > { %v479_v49 = vunpack.c.l.b16 %v329_v59  ;;  %v1084_v54 = vshrl.u32 %v3225_v19, 16  ;;  %v1077_v56 = vor.u32 %v1076_v45, %v1073_v40  ;;  %v1090_v57 = vshll.u32 %v3239_v39, 16 }
  0x4a   : > { %v2004_v0 = vsel %vm525_vm0, %v2732_v47, 0  ;;  %v1519_v31 = vsel %vm525_vm0, %v2642_v48, 0  ;;  %v779_v62 = vunpack.c.l.b16 %v724_v44  ;;  %v780_v63 = vunpack.c.l.b16 %v727_v52  ;;  %v3288_v47 = vld [vmem:[%s3072_s16 + $0x20] sm:$0x1] }
  0x4b   : > { %v493_v58 = vpack.c.b16 %v479_v49, %v478_v41  ;;  %v1086_v61 = vrot.slane %v1084_v54, 4  ;;  %2013 = vmatpush.bf16.msra.mxu3 %v2004_v0  ;;  %1528 = vmatpush.bf16.msra.mxu1 %v1519_v31  ;;  %v2210_v1 = vsel %vm525_vm0, %v2757_v55, 0  ;;  %v1078_v2 = vrot.slane %v1077_v56, 4  ;;  %v2599_v0 = vld [vmem:[%s3072_s16 + $0x24] sm:$0xf] }
  0x4c   : > { %v1092_v6 = vrot.slane %v1090_v57, 5  ;;  %2219 = vmatpush.bf16.msra.mxu0 %v2210_v1  ;;  %v795_v12 = vpack.c.b16 %v780_v63, %v779_v62  ;;  %v730_v13 = vrot.slane %v3202_v46, 5  ;;  %v1095_v20 = vshrl.u32 %v2596_v7, 16  ;;  %v2777_v46 = vld [vmem:[%s3072_s16 + $0xc] sm:$0xff]  ;;  %v3302_v31 = vld [vmem:[%s3072_s16 + $0x28] sm:$0xf] }
  0x4d   : > { %2472 = vmatmul.msk.bf16.gmra.mxu0 %vm500_vm3, %v493_v58  ;;  %v1087_v3 = vor.u32 %v1086_v61, %v1082_v53  ;;  %v1083_v14 = vsel %vm3106_vm4, %v1078_v2, %v1082_v53  ;;  %v1098_v21 = vshll.u32 %v2596_v7, 16  ;;  %v1104_v23 = vshll.u32 %v3269_v10, 16  ;;  %v2770_v58 = vld [vmem:[%s3072_s16 + $0xc] sm:$0xff] }
  0x4e   : > { %v1108_v27 = vshrl.u32 %v3269_v10, 16  ;;  %v2521_v28 = vrot.slane %v696_v11, 9  ;;  %v737_v29 = vrot.slane %v3085_v4, 5  ;;  %v740_v33 = vrot.slane %v3088_v5, 5 }
  0x4f   : > { %2511 = vmatmul.msk.bf16.vlgmr.msrb.gmra.mxu1 %vm500_vm3, %v2769_v60  ;;  %v1088_v8 = vrot.slane %v1087_v3, 4  ;;  %v1264_v34 = vunpack.c.l.b16 %v1083_v14  ;;  %v2520_v35 = vrot.slane %v695_v18, 9  ;;  %v732_v36 = vrot.slane %v730_v13, 4 }
  0x50   : > { %v733_v37 = vrot.slane %v3207_v50, 5  ;;  %v1097_v40 = vrot.slane %v1095_v20, 4  ;;  %v738_v59 = vsel %vm3229_vm7, %v2521_v28, %v737_v29  ;;  %v739_v41 = vrot.slane %v737_v29, 4 }
  0x51   : > { %v1093_v22 = vsel %vm3106_vm4, %v1088_v8, %v1092_v6  ;;  %v1100_v44 = vrot.slane %v1098_v21, 5  ;;  %v1106_v4 = vrot.slane %v1104_v23, 5  ;;  %v1110_v45 = vrot.slane %v1108_v27, 4  ;;  %v697_v6 = vld [vmem:[%s3072_s16 + $0x24] sm:$0xe]  ;;  %v2778_v27 = vld [vmem:[%s3072_s16 + $0x18] sm:$0xff] }
  0x52   : > { %v1265_v38 = vunpack.c.l.b16 %v1093_v22  ;;  %v783_v5 = vunpack.c.l.b16 %v738_v59  ;;  %v741_v48 = vsel %vm3229_vm7, %v739_v41, %v740_v33  ;;  %v731_v50 = vsel %vm3229_vm7, %v2520_v35, %v730_v13 }
  0x53   : > { %v734_v49 = vsel %vm3229_vm7, %v732_v36, %v733_v37  ;;  %v784_v52 = vunpack.c.l.b16 %v741_v48  ;;  %v1101_v54 = vor.u32 %v1100_v44, %v1097_v40  ;;  %v1111_v55 = vor.u32 %v1110_v45, %v1106_v4  ;;  %v3321_v36 = vld [vmem:[%s3072_s16 + $0x2c] sm:$0x1]  ;;  %v2771_v44 = vld [vmem:[%s3072_s16 + $0x18] sm:$0xff]  ;;  %v2602_v48 = vld [vmem:[%s3072_s16 + $0x30] sm:$0xf] }
  0x54   : > { %2528 = vmatmul.msk.bf16.vlgmr.msrb.gmra.mxu2 %vm500_vm3, %v795_v12  ;;  %v1280_v53 = vpack.c.b16 %v1265_v38, %v1264_v34  ;;  %v1114_v56 = vshll.u32 %v3288_v47, 16  ;;  %v781_v60 = vunpack.c.l.b16 %v731_v50  ;;  %v782_v61 = vunpack.c.l.b16 %v734_v49  ;;  %v3329_v50 = vld [vmem:[%s3072_s16 + $0x34] sm:$0xf] }
  0x55   : > { %v797_v57 = vpack.c.b16 %v784_v52, %v783_v5  ;;  %v1102_v62 = vrot.slane %v1101_v54, 4  ;;  %v1112_v63 = vrot.slane %v1111_v55, 4  ;;  %v1119_v3 = vshrl.u32 %v2599_v0, 16 }
  0x56   : > { %v1116_v1 = vrot.slane %v1114_v56, 5  ;;  %v796_v2 = vpack.c.b16 %v782_v61, %v781_v60  ;;  %v744_v7 = vrot.slane %v3157_v25, 5  ;;  %v747_v8 = vrot.slane %v3162_v32, 5 }
  0x57   : > { %v1122_v11 = vshll.u32 %v2599_v0, 16  ;;  %v1128_v12 = vshll.u32 %v3302_v31, 16  ;;  %v1132_v13 = vshrl.u32 %v3302_v31, 16  ;;  %v2522_v14 = vrot.slane %v697_v6, 9 }
  0x58   : > { %2585 = vmatmul.msk.bf16.vlgmr.msrb.gmra.mxu3 %vm500_vm3, %v2777_v46  ;;  %v746_v18 = vrot.slane %v744_v7, 4  ;;  %v1107_v20 = vsel %vm3106_vm4, %v1102_v62, %v1106_v4  ;;  %v1117_v21 = vsel %vm3106_vm4, %v1112_v63, %v1116_v1  ;;  %v1121_v25 = vrot.slane %v1119_v3, 4 }
  0x59   : > { %v745_v22 = vsel %vm3229_vm7, %v2522_v14, %v744_v7  ;;  %v1124_v28 = vrot.slane %v1122_v11, 5  ;;  %v1130_v29 = vrot.slane %v1128_v12, 5  ;;  %v1134_v33 = vrot.slane %v1132_v13, 4  ;;  %v2605_v14 = vld [vmem:[%s3072_s16 + $0x3c] sm:$0xf] }
  0x5a   : > { %v748_v32 = vsel %vm3229_vm7, %v746_v18, %v747_v8  ;;  %v785_v23 = vunpack.c.l.b16 %v745_v22  ;;  %v1266_v34 = vunpack.c.l.b16 %v1107_v20  ;;  %v1267_v35 = vunpack.c.l.b16 %v1117_v21  ;;  %v3350_v18 = vld [vmem:[%s3072_s16 + $0x40] sm:$0xf] }
  0x5b   : > { %v786_v46 = vunpack.c.l.b16 %v748_v32  ;;  %v1125_v38 = vor.u32 %v1124_v28, %v1121_v25  ;;  %v1135_v40 = vor.u32 %v1134_v33, %v1130_v29  ;;  %v1138_v59 = vshll.u32 %v3321_v36, 16  ;;  %v698_v25 = vld [vmem:[%s3072_s16 + $0x30] sm:$0xe] }
  0x5c   : > { %v1281_v41 = vpack.c.b16 %v1267_v35, %v1266_v34  ;;  %v1146_v54 = vshll.u32 %v2602_v48, 16  ;;  %v1152_v55 = vshll.u32 %v3329_v50, 16  ;;  %v1156_v56 = vshrl.u32 %v3329_v50, 16 }
  0x5d   : > { %2618 = vmatmul.msk.bf16.vlgmr.msrb.gmra.mxu0 %vm500_vm3, %v1280_v53  ;;  %v798_v37 = vpack.c.b16 %v786_v46, %v785_v23  ;;  %v1126_v4 = vrot.slane %v1125_v38, 4  ;;  %v1136_v45 = vrot.slane %v1135_v40, 4  ;;  %v1140_v5 = vrot.slane %v1138_v59, 5 }
  0x5e   : > { %v1143_v53 = vshrl.u32 %v2602_v48, 16  ;;  %v1148_v62 = vrot.slane %v1146_v54, 5  ;;  %v1154_v63 = vrot.slane %v1152_v55, 5  ;;  %v1158_v1 = vrot.slane %v1156_v56, 4  ;;  %v2608_v54 = vld [vmem:[%s3072_s16 + $0x48] sm:$0xf] }
  0x5f   : > { %2512 = vmatmul.msk.bf16.gmra.mxu1 %vm500_vm3, %v2770_v58  ;;  %v1131_v49 = vsel %vm3106_vm4, %v1126_v4, %v1130_v29  ;;  %v1141_v52 = vsel %vm3106_vm4, %v1136_v45, %v1140_v5  ;;  %v2779_v58 = vld [vmem:[%s3072_s16 + $0x24] sm:$0xff]  ;;  %v751_v22 = vrot.slane %v3095_v15, 5  ;;  %v1167_v32 = vshrl.u32 %v2605_v14, 16  ;;  %v2780_v29 = vld [vmem:[%s3072_s16 + $0x30] sm:$0xff] }
  0x60   : > { %v1268_v60 = vunpack.c.l.b16 %v1131_v49  ;;  %v1269_v61 = vunpack.c.l.b16 %v1141_v52  ;;  %v1145_v0 = vrot.slane %v1143_v53, 4  ;;  %v1159_v7 = vor.u32 %v1158_v1, %v1154_v63  ;;  %v2773_v49 = vld [vmem:[%s3072_s16 + $0x30] sm:$0xff]  ;;  %v699_v1 = vld [vmem:[%s3072_s16 + $0x3c] sm:$0xe] }
  0x61   : > { %v1170_v23 = vshll.u32 %v2605_v14, 16  ;;  %v1180_v28 = vshrl.u32 %v3350_v18, 16  ;;  %v2523_v34 = vrot.slane %v698_v25, 9  ;;  %v753_v35 = vrot.slane %v751_v22, 4 }
  0x62   : > { %v1282_v3 = vpack.c.b16 %v1269_v61, %v1268_v60  ;;  %v1149_v6 = vor.u32 %v1148_v62, %v1145_v0  ;;  %v1160_v12 = vrot.slane %v1159_v7, 4  ;;  %v754_v38 = vrot.slane %v3098_v16, 5  ;;  %v3376_v60 = vld [vmem:[%s3072_s16 + $0x4c] sm:$0xf] }
  0x63   : > { %v1169_v40 = vrot.slane %v1167_v32, 4  ;;  %v1172_v15 = vrot.slane %v1170_v23, 5  ;;  %v758_v0 = vrot.slane %v3169_v43, 5  ;;  %v1191_v62 = vshrl.u32 %v2608_v54, 16  ;;  %v3391_v32 = vld [vmem:[%s3072_s16 + $0x50] sm:$0x1] }
  0x64   : > { %2529 = vmatmul.msk.bf16.gmra.mxu2 %vm500_vm3, %v796_v2  ;;  %v3341_v2 = vld [vmem:[%s3072_s16 + $0x38] sm:$0x1]  ;;  %v1150_v11 = vrot.slane %v1149_v6, 4  ;;  %v755_v45 = vsel %vm3229_vm7, %v753_v35, %v754_v38  ;;  %v1204_v6 = vshrl.u32 %v3376_v60, 16  ;;  %v2524_v43 = vrot.slane %v699_v1, 9 }
  0x65   : > { %v1162_v8 = vshll.u32 %v3341_v2, 16  ;;  %v1173_v5 = vor.u32 %v1172_v15, %v1169_v40  ;;  %v788_v53 = vunpack.c.l.b16 %v755_v45  ;;  %v768_v1 = vrot.slane %v3116_v42, 5 }
  0x66   : > { %v1155_v20 = vsel %vm3106_vm4, %v1150_v11, %v1154_v63  ;;  %v1194_v63 = vshll.u32 %v2608_v54, 16  ;;  %v2781_v11 = vld [vmem:[%s3072_s16 + $0x3c] sm:$0xff]  ;;  %v1206_v25 = vrot.slane %v1204_v6, 4 }
  0x67   : > { %v1164_v13 = vrot.slane %v1162_v8, 5  ;;  %v1270_v33 = vunpack.c.l.b16 %v1155_v20  ;;  %v1174_v55 = vrot.slane %v1173_v5, 4  ;;  %v3418_v6 = vld [vmem:[%s3072_s16 + $0x5c] sm:$0x1] }
  0x68   : > { %2586 = vmatmul.msk.bf16.gmra.mxu3 %vm500_vm3, %v2778_v27  ;;  %v1176_v27 = vshll.u32 %v3350_v18, 16  ;;  %v1196_v14 = vrot.slane %v1194_v63, 5  ;;  %v1234_v42 = vshll.u32 %v3418_v6, 16 }
  0x69   : > { %v1165_v21 = vsel %vm3106_vm4, %v1160_v12, %v1164_v13  ;;  %v760_v12 = vrot.slane %v758_v0, 4  ;;  %v1193_v13 = vrot.slane %v1191_v62, 4 }
  0x6a   : > { %v1271_v46 = vunpack.c.l.b16 %v1165_v21  ;;  %v1178_v59 = vrot.slane %v1176_v27, 5 }
  0x6b   : > { %v1197_v27 = vor.u32 %v1196_v14, %v1193_v13 }
  0x6c   : > { %v1283_v4 = vpack.c.b16 %v1271_v46, %v1270_v33  ;;  %v1179_v7 = vsel %vm3106_vm4, %v1174_v55, %v1178_v59  ;;  %v1210_v33 = vshll.u32 %v3391_v32, 16  ;;  %v2774_v46 = vld [vmem:[%s3072_s16 + $0x3c] sm:$0xff]  ;;  %v2782_v55 = vld [vmem:[%s3072_s16 + $0x48] sm:$0xff] }
  0x6d   : > { %2619 = vmatmul.msk.bf16.gmra.mxu0 %vm500_vm3, %v1281_v41  ;;  %v1182_v41 = vrot.slane %v1180_v28, 4  ;;  %v1272_v20 = vunpack.c.l.b16 %v1179_v7  ;;  %v1198_v38 = vrot.slane %v1197_v27, 4  ;;  %v772_v27 = vrot.slane %v3187_v9, 5  ;;  %v2783_v9 = vld [vmem:[%s3072_s16 + $0x54] sm:$0xff] }
  0x6e   : > { %v1212_v15 = vrot.slane %v1210_v33, 5  ;;  %v701_v33 = vld [vmem:[%s3072_s16 + $0x54] sm:$0xe] }
  0x6f   : > { %2513 = vmatmul.msk.bf16.gmra.mxu1 %vm500_vm3, %v2771_v44  ;;  %v3364_v44 = vld [vmem:[%s3072_s16 + $0x44] sm:$0x1]  ;;  %v1183_v48 = vor.u32 %v1182_v41, %v1178_v59  ;;  %v2611_v59 = vld [vmem:[%s3072_s16 + $0x54] sm:$0xf]  ;;  %v3403_v41 = vld [vmem:[%s3072_s16 + $0x58] sm:$0xf] }
  0x70   : > { %v1186_v16 = vshll.u32 %v3364_v44, 16  ;;  %v1215_v45 = vshrl.u32 %v2611_v59, 16  ;;  %v1218_v5 = vshll.u32 %v2611_v59, 16  ;;  %v2526_v59 = vrot.slane %v701_v33, 9 }
  0x71   : > { %v1184_v56 = vrot.slane %v1183_v48, 4  ;;  %v1224_v48 = vshll.u32 %v3403_v41, 16 }
  0x74   : > { %2530 = vmatmul.msk.bf16.gmra.mxu2 %vm500_vm3, %v797_v57  ;;  %v2772_v57 = vld [vmem:[%s3072_s16 + $0x24] sm:$0xff] }
  0x78   : > { %2587 = vmatmul.msk.bf16.gmra.mxu3 %vm500_vm3, %v2779_v58  ;;  %v1188_v58 = vrot.slane %v1186_v16, 5 }
  0x7a   : > { %v1189_v8 = vsel %vm3106_vm4, %v1184_v56, %v1188_v58  ;;  %v1217_v58 = vrot.slane %v1215_v45, 4 }
  0x7b   : > { %v1273_v21 = vunpack.c.l.b16 %v1189_v8 }
  0x7d   : > { %2620 = vmatmul.msk.bf16.gmra.mxu0 %vm500_vm3, %v1282_v3  ;;  %v1200_v3 = vshll.u32 %v3376_v60, 16  ;;  %v1284_v28 = vpack.c.b16 %v1273_v21, %v1272_v20 }
  0x7f   : > { %2514 = vmatmul.msk.bf16.gmra.mxu1 %vm500_vm3, %v2772_v57  ;;  %v761_v57 = vrot.slane %v3176_v51, 5  ;;  %v759_v51 = vsel %vm3229_vm7, %v2524_v43, %v758_v0  ;;  %v1226_v0 = vrot.slane %v1224_v48, 5 }
  0x81   : > { %v762_v23 = vsel %vm3229_vm7, %v760_v12, %v761_v57  ;;  %v2775_v12 = vld [vmem:[%s3072_s16 + $0x48] sm:$0xff] }
  0x82   : > { %v790_v35 = vunpack.c.l.b16 %v762_v23 }
  0x84   : > { %2531 = vmatmul.msk.bf16.gmra.mxu2 %vm500_vm3, %v798_v37  ;;  %v752_v37 = vsel %vm3229_vm7, %v2523_v34, %v751_v22  ;;  %v1202_v22 = vrot.slane %v1200_v3, 5  ;;  %v789_v34 = vunpack.c.l.b16 %v759_v51  ;;  %v3433_v51 = vld [vmem:[%s3072_s16 + $0x64] sm:$0xf] }
  0x85   : > { %v787_v52 = vunpack.c.l.b16 %v752_v37 }
  0x86   : > { %v1203_v37 = vsel %vm3106_vm4, %v1198_v38, %v1202_v22  ;;  %v1248_v38 = vshll.u32 %v3433_v51, 16 }
  0x87   : > { %v799_v61 = vpack.c.b16 %v788_v53, %v787_v52  ;;  %v1228_v52 = vshrl.u32 %v3403_v41, 16  ;;  %v700_v53 = vld [vmem:[%s3072_s16 + $0x48] sm:$0xe]  ;;  %v1274_v54 = vunpack.c.l.b16 %v1203_v37  ;;  %v775_v37 = vrot.slane %v3190_v17, 5 }
  0x88   : > { %2588 = vmatmul.msk.bf16.gmra.mxu3 %vm500_vm3, %v2780_v29  ;;  %v1207_v29 = vor.u32 %v1206_v25, %v1202_v22  ;;  %v2525_v62 = vrot.slane %v700_v53, 9  ;;  %v1236_v22 = vrot.slane %v1234_v42, 5  ;;  %v2614_v25 = vld [vmem:[%s3072_s16 + $0x60] sm:$0xf] }
  0x89   : > { %v1230_v3 = vrot.slane %v1228_v52, 4 }
  0x8a   : > { %v1208_v40 = vrot.slane %v1207_v29, 4 }
  0x8b   : > { %v1231_v43 = vor.u32 %v1230_v3, %v1226_v0  ;;  %v2776_v3 = vld [vmem:[%s3072_s16 + $0x54] sm:$0xff] }
  0x8c   : > { %v1213_v16 = vsel %vm3106_vm4, %v1208_v40, %v1212_v15  ;;  %v1252_v40 = vshrl.u32 %v3433_v51, 16 }
  0x8d   : > { %2621 = vmatmul.msk.bf16.gmra.mxu0 %vm500_vm3, %v1283_v4  ;;  %v800_v4 = vpack.c.b16 %v790_v35, %v789_v34  ;;  %v1275_v56 = vunpack.c.l.b16 %v1213_v16  ;;  %v1232_v21 = vrot.slane %v1231_v43, 4  ;;  %v1239_v34 = vshrl.u32 %v2614_v25, 16 }
  0x8e   : > { %v1242_v35 = vshll.u32 %v2614_v25, 16  ;;  %v1254_v52 = vrot.slane %v1252_v40, 4 }
  0x8f   : > { %2515 = vmatmul.msk.bf16.gmra.mxu1 %vm500_vm3, %v2773_v49  ;;  %v765_v49 = vrot.slane %v3111_v30, 5  ;;  %v1285_v30 = vpack.c.b16 %v1275_v56, %v1274_v54  ;;  %v1237_v29 = vsel %vm3106_vm4, %v1232_v21, %v1236_v22  ;;  %v1241_v48 = vrot.slane %v1239_v34, 4 }
  0x90   : > { %v1244_v16 = vrot.slane %v1242_v35, 5  ;;  %v773_v56 = vsel %vm3229_vm7, %v2526_v59, %v772_v27  ;;  %v2710_v59 = vld [vmem:[%s3072_s16 + $0x20] sm:$0x1] }
  0x91   : > { %v767_v63 = vrot.slane %v765_v49, 4  ;;  %v766_v57 = vsel %vm3229_vm7, %v2525_v62, %v765_v49  ;;  %v1250_v49 = vrot.slane %v1248_v38, 5 }
  0x92   : > { %v791_v13 = vunpack.c.l.b16 %v766_v57 }
  0x93   : > { %v1255_v62 = vor.u32 %v1254_v52, %v1250_v49 }
  0x94   : > { %2532 = vmatmul.msk.bf16.gmra.mxu2 %vm500_vm3, %v799_v61  ;;  %v1220_v61 = vrot.slane %v1218_v5, 5  ;;  %v1277_v5 = vunpack.c.l.b16 %v1237_v29 }
  0x95   : > { %v1256_v22 = vrot.slane %v1255_v62, 4  ;;  %v3500_v62 = vld [vmem:[%s3072_s16 + $0x28] sm:$0xf] }
  0x96   : > { %v1221_v7 = vor.u32 %v1220_v61, %v1217_v58  ;;  %v2708_v61 = vld [vmem:[%s3072_s16 + $0x18] sm:$0xf] }
  0x97   : > { %v1762_v43 = vshrl.u32 %v2708_v61, 16  ;;  %v1765_v42 = vshll.u32 %v2708_v61, 16 }
  0x98   : > { %2589 = vmatmul.msk.bf16.gmra.mxu3 %vm500_vm3, %v2781_v11  ;;  %v769_v11 = vsel %vm3229_vm7, %v767_v63, %v768_v1  ;;  %v1222_v20 = vrot.slane %v1221_v7, 4  ;;  %v3465_v1 = vld [vmem:[%s3072_s16 + $0x1c] sm:$0xf] }
  0x99   : > { %v792_v14 = vunpack.c.l.b16 %v769_v11  ;;  %v1414_v11 = vrot.slane %v3225_v19, 5  ;;  %v1764_v33 = vrot.slane %v1762_v43, 4  ;;  %v1767_v34 = vrot.slane %v1765_v42, 5 }
  0x9a   : > { %v2105_v43 = vrot.slane %v3465_v1, 5 }
  0x9b   : > { %v801_v23 = vpack.c.b16 %v792_v14, %v791_v13  ;;  %v2626_v13 = vld [vmem:[%s3072_s16 + $0xc] sm:$0xe]  ;;  %v1771_v14 = vshll.u32 %v3465_v1, 16  ;;  %v1416_v29 = vrot.slane %v1414_v11, 4 }
  0x9d   : > { %2622 = vmatmul.msk.bf16.gmra.mxu0 %vm500_vm3, %v1284_v28  ;;  %v1227_v28 = vsel %vm3106_vm4, %v1222_v20, %v1226_v0  ;;  %v1245_v0 = vor.u32 %v1244_v16, %v1241_v48  ;;  %v1775_v20 = vshrl.u32 %v3465_v1, 16  ;;  %v1773_v38 = vrot.slane %v1771_v14, 5 }
  0x9e   : > { %v1276_v45 = vunpack.c.l.b16 %v1227_v28  ;;  %v2634_v28 = vrot.slane %v2626_v13, 9  ;;  %v1768_v48 = vor.u32 %v1767_v34, %v1764_v33  ;;  %v1421_v1 = vrot.slane %v3269_v10, 5  ;;  %v2713_v10 = vld [vmem:[%s3072_s16 + $0x2c] sm:$0x1] }
  0x9f   : > { %2516 = vmatmul.msk.bf16.gmra.mxu1 %vm500_vm3, %v2774_v46  ;;  %v1246_v21 = vrot.slane %v1245_v0, 4  ;;  %v1777_v40 = vrot.slane %v1775_v20, 4  ;;  %v2711_v0 = vld [vmem:[%s3072_s16 + $0x24] sm:$0xf]  ;;  %v1795_v20 = vshll.u32 %v3500_v62, 16  ;;  %v2107_v34 = vrot.slane %v2105_v43, 4 }
  0xa0   : > { %v1286_v58 = vpack.c.b16 %v1277_v5, %v1276_v45  ;;  %v1415_v45 = vsel %vm3229_vm7, %v2634_v28, %v1414_v11  ;;  %v2741_v11 = vld [vmem:[%s3072_s16 + $0x18] sm:$0xe]  ;;  %v1786_v13 = vshrl.u32 %v2711_v0, 16  ;;  %v1789_v14 = vshll.u32 %v2711_v0, 16 }
  0xa1   : > { %v1778_v52 = vor.u32 %v1777_v40, %v1773_v38  ;;  %v2749_v28 = vrot.slane %v2741_v11, 9  ;;  %v2108_v40 = vrot.slane %v2710_v59, 5 }
  0xa4   : > { %2533 = vmatmul.msk.bf16.gmra.mxu2 %vm500_vm3, %v800_v4  ;;  %v774_v4 = vrot.slane %v772_v27, 4 }
  0xa6   : > { %v776_v17 = vsel %vm3229_vm7, %v774_v4, %v775_v37  ;;  %v2784_v4 = vld [vmem:[%s3072_s16 + $0x60] sm:$0xff] }
  0xa7   : > { %v794_v7 = vunpack.c.l.b16 %v776_v17 }
  0xa8   : > { %2590 = vmatmul.msk.bf16.gmra.mxu3 %vm500_vm3, %v2782_v55  ;;  %v3455_v55 = vld [vmem:[%s3072_s16 + $0x68] sm:$0x1] }
  0xa9   : > { %v3421_v8 = vpop.f32.mrf.mxu1  ;;  %v1258_v63 = vshll.u32 %v3455_v55, 16 }
  0xab   : > { %v1260_v25 = vrot.slane %v1258_v63, 5  ;;  %v1769_v63 = vrot.slane %v1768_v48, 4 }
  0xad   : > { %2623 = vmatmul.msk.bf16.gmra.mxu0 %vm500_vm3, %v1285_v30  ;;  %v793_v30 = vunpack.c.l.b16 %v773_v56  ;;  %v1781_v56 = vshll.u32 %v2710_v59, 16  ;;  %v2106_v59 = vsel %vm3229_vm7, %v2749_v28, %v2105_v43 }
  0xaf   : > { %2517 = vmatmul.msk.bf16.gmra.mxu1 %vm500_vm3, %v2775_v12  ;;  %v802_v19 = vpack.c.b16 %v794_v7, %v793_v30  ;;  %v1779_v30 = vrot.slane %v1778_v52, 4  ;;  %v1783_v7 = vrot.slane %v1781_v56, 5  ;;  %v1424_v56 = vrot.slane %v3288_v47, 5 }
  0xb1   : > { %v3441_v46 = vpop.f32.mrf.mxu1  ;;  %v1784_v33 = vsel %vm3106_vm4, %v1779_v30, %v1783_v7 }
  0xb2   : > { %v3445_v15 = vpop.f32.mrf.mxu2 }
  0xb4   : > { %2534 = vmatmul.msk.bf16.gmra.mxu2 %vm500_vm3, %v801_v23  ;;  %v1417_v23 = vrot.slane %v3239_v39, 5  ;;  %v1261_v39 = vsel %vm3106_vm4, %v1256_v22, %v1260_v25 }
  0xb6   : > { %v3452_v54 = vpop.f32.mrf.mxu3  ;;  %v1418_v5 = vsel %vm3229_vm7, %v1416_v29, %v1417_v23 }
  0xb7   : > { %v3450_v53 = vpop.f32.mrf.mxu0  ;;  %v1471_v61 = vunpack.c.l.b16 %v1418_v5 }
  0xb8   : > { %2591 = vmatmul.msk.bf16.gmra.mxu3 %vm500_vm3, %v2783_v9  ;;  %v1251_v9 = vsel %vm3106_vm4, %v1246_v21, %v1250_v49  ;;  %v1279_v49 = vunpack.c.l.b16 %v1261_v39  ;;  %v1799_v21 = vshrl.u32 %v3500_v62, 16  ;;  %v1788_v39 = vrot.slane %v1786_v13, 4 }
  0xb9   : > { %v1278_v16 = vunpack.c.l.b16 %v1251_v9  ;;  %v2627_v9 = vld [vmem:[%s3072_s16 + $0x18] sm:$0xe]  ;;  %v2161_v13 = vunpack.c.l.b16 %v2106_v59 }
  0xba   : > { %v3472_v12 = vpop.f32.mrf.mxu2  ;;  %v1801_v5 = vrot.slane %v1799_v21, 4  ;;  %v2635_v52 = vrot.slane %v2627_v9, 9  ;;  %v2714_v9 = vld [vmem:[%s3072_s16 + $0x30] sm:$0xf] }
  0xbc   : > { %v3468_v57 = vpop.f32.mrf.mxu1  ;;  %v1422_v47 = vsel %vm3229_vm7, %v2635_v52, %v1421_v1 }
  0xbd   : > { %2624 = vmatmul.msk.bf16.gmra.mxu0 %vm500_vm3, %v1286_v58  ;;  %v1470_v58 = vunpack.c.l.b16 %v1415_v45  ;;  %v1797_v45 = vrot.slane %v1795_v20, 5  ;;  %v1472_v28 = vunpack.c.l.b16 %v1422_v47 }
  0xbe   : > { %v3481_v35 = vpop.f32.mrf.mxu3 }
  0xbf   : > { %2518 = vmatmul.msk.bf16.gmra.mxu1 %vm500_vm3, %v2776_v3  ;;  %v3479_v27 = vpop.f32.mrf.mxu0  ;;  %v1287_v3 = vpack.c.b16 %v1279_v49, %v1278_v16  ;;  %v1486_v25 = vpack.c.b16 %v1471_v61, %v1470_v58  ;;  %v2785_v16 = vld [vmem:[%s3072_s16 + $0x18] sm:$0xff]  ;;  %v1956_v49 = vunpack.c.l.b16 %v1784_v33  ;;  %v2109_v61 = vsel %vm3229_vm7, %v2107_v34, %v2108_v40  ;;  %v2742_v34 = vld [vmem:[%s3072_s16 + $0x24] sm:$0xe] }
  0xc0   : > { %v2112_v40 = vrot.slane %v3500_v62, 5  ;;  %v2115_v62 = vrot.slane %v2713_v10, 5 }
  0xc4   : > { %2535 = vmatmul.msk.bf16.gmra.mxu2 %vm500_vm3, %v802_v19  ;;  %v3490_v37 = vpop.f32.mrf.mxu1  ;;  %v1774_v19 = vsel %vm3106_vm4, %v1769_v63, %v1773_v38  ;;  %v1802_v63 = vor.u32 %v1801_v5, %v1797_v45 }
  0xc5   : > { %v1955_v48 = vunpack.c.l.b16 %v1774_v19 }
  0xc7   : > { %v3496_v17 = vpop.f32.mrf.mxu2  ;;  %v1971_v7 = vpack.c.b16 %v1956_v49, %v1955_v48  ;;  %v2750_v48 = vrot.slane %v2742_v34, 9 }
  0xc8   : > { %2592 = vmatmul.msk.bf16.gmra.mxu3 %vm500_vm3, %v2784_v4  ;;  %v1791_v4 = vrot.slane %v1789_v14, 5  ;;  %v2162_v14 = vunpack.c.l.b16 %v2109_v61  ;;  %v1428_v61 = vrot.slane %v3302_v31, 5 }
  0xc9   : > { %v2113_v31 = vsel %vm3229_vm7, %v2750_v48, %v2112_v40 }
  0xca   : > { %v3505_v42 = vpop.f32.mrf.mxu0  ;;  %v1792_v0 = vor.u32 %v1791_v4, %v1788_v39  ;;  %v2177_v39 = vpack.c.b16 %v2162_v14, %v2161_v13 }
  0xcb   : > { %v3509_v22 = vpop.f32.mrf.mxu3 }
  0xcc   : > { %v654_v23 = vpop.f32.mrf.mxu1  ;;  %v1793_v21 = vrot.slane %v1792_v0, 4  ;;  %v1813_v0 = vshll.u32 %v2714_v9, 16 }
  0xcd   : > { %2625 = vmatmul.msk.bf16.gmra.mxu0 %vm500_vm3, %v1287_v3  ;;  %v655_v29 = vadd.f32 %v654_v23, %v3450_v53  ;;  %v1423_v53 = vrot.slane %v1421_v1, 4  ;;  %v1805_v3 = vshll.u32 %v2713_v10, 16 }
  0xcf   : > { %v3519_v38 = vpop.f32.mrf.mxu2  ;;  %2643 = vmatmul.msk.bf16.vlgmr.msra.gmra.mxu1 %vm500_vm3, %v1486_v25  ;;  %v1425_v43 = vsel %vm3229_vm7, %v1423_v53, %v1424_v56  ;;  %v1803_v25 = vrot.slane %v1802_v63, 4  ;;  %v1807_v23 = vrot.slane %v1805_v3, 5  ;;  %v2114_v53 = vrot.slane %v2112_v40, 4  ;;  %v2628_v63 = vld [vmem:[%s3072_s16 + $0x24] sm:$0xe] }
  0xd0   : > { %v1473_v33 = vunpack.c.l.b16 %v1425_v43  ;;  %v1810_v56 = vshrl.u32 %v2714_v9, 16  ;;  %v2163_v40 = vunpack.c.l.b16 %v2113_v31 }
  0xd1   : > { %v1808_v5 = vsel %vm3106_vm4, %v1803_v25, %v1807_v23  ;;  %v2116_v13 = vsel %vm3229_vm7, %v2114_v53, %v2115_v62  ;;  %v2786_v25 = vld [vmem:[%s3072_s16 + $0x24] sm:$0xff]  ;;  %v2636_v23 = vrot.slane %v2628_v63, 9  ;;  %v3577_v63 = vld [vmem:[%s3072_s16 + $0x40] sm:$0xf] }
  0xd2   : > { %v3527_v58 = vpop.f32.mrf.mxu0  ;;  %v1487_v52 = vpack.c.b16 %v1473_v33, %v1472_v28  ;;  %v1958_v10 = vunpack.c.l.b16 %v1808_v5 }
  0xd3   : > { %v3531_v30 = vpop.f32.mrf.mxu3 }
  0xd4   : > { %2700 = vmatmul.msk.bf16.vlgmr.msra.gmra.mxu2 %vm500_vm3, %v2785_v16  ;;  %v656_v11 = vpop.f32.mrf.mxu1  ;;  %v3548_v16 = vld [vmem:[%s3072_s16 + $0x34] sm:$0xf] }
  0xd5   : > { %v657_v20 = vadd.f32 %v656_v11, %v3479_v27  ;;  %v1798_v27 = vsel %vm3106_vm4, %v1793_v21, %v1797_v45  ;;  %v1819_v3 = vshll.u32 %v3548_v16, 16  ;;  %v1431_v11 = vrot.slane %v3321_v36, 5 }
  0xd6   : > { %v1957_v47 = vunpack.c.l.b16 %v1798_v27  ;;  %v1815_v36 = vrot.slane %v1813_v0, 5  ;;  %v2164_v27 = vunpack.c.l.b16 %v2116_v13  ;;  %v2717_v0 = vld [vmem:[%s3072_s16 + $0x3c] sm:$0xf] }
  0xd7   : > { %v839_v19 = vpop.f32.mrf.mxu2  ;;  %v1821_v28 = vrot.slane %v1819_v3, 5  ;;  %v1834_v13 = vshrl.u32 %v2717_v0, 16 }
  0xd8   : > { %2733 = vmatmul.msk.bf16.vlgmr.msra.gmra.mxu3 %vm500_vm3, %v1971_v7  ;;  %v879_v1 = vadd.f32 %v839_v19, %v655_v29  ;;  %v1823_v7 = vshrl.u32 %v3548_v16, 16  ;;  %v1430_v19 = vrot.slane %v1428_v61, 4  ;;  %v2178_v3 = vpack.c.b16 %v2164_v27, %v2163_v40 }
  0xda   : > { %v1324_v4 = vpop.f32.mrf.mxu0  ;;  %v1825_v33 = vrot.slane %v1823_v7, 4  ;;  %v1432_v48 = vsel %vm3229_vm7, %v1430_v19, %v1431_v11 }
  0xdb   : > { %v990_v49 = vpop.f32.mrf.mxu3 }
  0xdc   : > { %v1030_v59 = vadd.f32 %v990_v49, %v879_v1  ;;  %v659_v29 = vpop.f32.mrf.mxu1  ;;  %v3566_v1 = vld [vmem:[%s3072_s16 + $0x38] sm:$0x1]  ;;  %v1826_v53 = vor.u32 %v1825_v33, %v1821_v28 }
  0xdd   : > { %2758 = vmatmul.msk.bf16.vlgmr.msra.gmra.mxu0 %vm500_vm3, %v2177_v39  ;;  %v660_v45 = vadd.f32 %v659_v29, %v3505_v42  ;;  %v1812_v42 = vrot.slane %v1810_v56, 4  ;;  %v1972_v39 = vpack.c.b16 %v1958_v10, %v1957_v47  ;;  %v1829_v62 = vshll.u32 %v3566_v1, 16  ;;  %v2743_v10 = vld [vmem:[%s3072_s16 + $0x30] sm:$0xe] }
  0xde   : > { %v3562_v14 = vadd.f32 %v1324_v4, %v1030_v59  ;;  %v1475_v29 = vunpack.c.l.b16 %v1432_v48  ;;  %v1827_v47 = vrot.slane %v1826_v53, 4  ;;  %v2122_v27 = vrot.slane %v3566_v1, 5 }
  0xdf   : > { %v841_v43 = vpop.f32.mrf.mxu2  ;;  %2644 = vmatmul.msk.bf16.gmra.mxu1 %vm500_vm3, %v1487_v52  ;;  %v1816_v49 = vor.u32 %v1815_v36, %v1812_v42  ;;  %v1831_v11 = vrot.slane %v1829_v62, 5  ;;  %v1837_v42 = vshll.u32 %v2717_v0, 16  ;;  %v3598_v62 = vld [vmem:[%s3072_s16 + $0x44] sm:$0x1] }
  0xe0   : > { %v880_v21 = vadd.f32 %v841_v43, %v657_v20  ;;  %v1429_v20 = vsel %vm3229_vm7, %v2636_v23, %v1428_v61  ;;  %v2119_v43 = vrot.slane %v3548_v16, 5  ;;  %v1435_v16 = vrot.slane %v3329_v50, 5 }
  0xe1   : > { %v1474_v59 = vunpack.c.l.b16 %v1429_v20  ;;  %v1817_v7 = vrot.slane %v1816_v49, 4  ;;  %v1839_v20 = vrot.slane %v1837_v42, 5  ;;  %v1438_v49 = vrot.slane %v3341_v2, 5 }
  0xe2   : > { %v1326_v34 = vpop.f32.mrf.mxu0  ;;  %v2121_v40 = vrot.slane %v2119_v43, 4  ;;  %v1437_v1 = vrot.slane %v1435_v16, 4 }
  0xe3   : > { %v992_v9 = vpop.f32.mrf.mxu3  ;;  %v1488_v19 = vpack.c.b16 %v1475_v29, %v1474_v59  ;;  %v1822_v33 = vsel %vm3106_vm4, %v1817_v7, %v1821_v28  ;;  %v2787_v59 = vld [vmem:[%s3072_s16 + $0x30] sm:$0xff] }
  0xe4   : > { %v1031_v5 = vadd.f32 %v992_v9, %v880_v21  ;;  %2701 = vmatmul.msk.bf16.gmra.mxu2 %vm500_vm3, %v2786_v25  ;;  %v661_v4 = vpop.f32.mrf.mxu1  ;;  %v1843_v21 = vshll.u32 %v3577_v63, 16  ;;  %v1847_v25 = vshrl.u32 %v3577_v63, 16  ;;  %v2751_v9 = vrot.slane %v2743_v10, 9 }
  0xe5   : > { %v662_v52 = vadd.f32 %v661_v4, %v3527_v58  ;;  %v1836_v4 = vrot.slane %v1834_v13, 4  ;;  %v1959_v50 = vunpack.c.l.b16 %v1822_v33  ;;  %v2123_v2 = vsel %vm3229_vm7, %v2121_v40, %v2122_v27  ;;  %v2744_v40 = vld [vmem:[%s3072_s16 + $0x3c] sm:$0xe] }
  0xe6   : > { %v3582_v58 = vadd.f32 %v1326_v34, %v1031_v5  ;;  %v2629_v5 = vld [vmem:[%s3072_s16 + $0x30] sm:$0xe]  ;;  %v1845_v48 = vrot.slane %v1843_v21, 5  ;;  %v1849_v28 = vrot.slane %v1847_v25, 4  ;;  %v2166_v25 = vunpack.c.l.b16 %v2123_v2  ;;  %v2630_v2 = vld [vmem:[%s3072_s16 + $0x3c] sm:$0xe] }
  0xe7   : > { %v844_v56 = vpop.f32.mrf.mxu2  ;;  %v2637_v0 = vrot.slane %v2629_v5, 9  ;;  %v1840_v7 = vor.u32 %v1839_v20, %v1836_v4  ;;  %v2126_v27 = vrot.slane %v3577_v63, 5  ;;  %v2720_v5 = vld [vmem:[%s3072_s16 + $0x48] sm:$0xf] }
  0xe8   : > { %2734 = vmatmul.msk.bf16.gmra.mxu3 %vm500_vm3, %v1972_v39  ;;  %v881_v61 = vadd.f32 %v844_v56, %v660_v45  ;;  %v1832_v39 = vsel %vm3106_vm4, %v1827_v47, %v1831_v11  ;;  %v1850_v47 = vor.u32 %v1849_v28, %v1845_v48  ;;  %v1853_v11 = vshll.u32 %v3598_v62, 16 }
  0xe9   : > { %v1960_v29 = vunpack.c.l.b16 %v1832_v39  ;;  %v1436_v42 = vsel %vm3229_vm7, %v2637_v0, %v1435_v16 }
  0xea   : > { %v1329_v31 = vpop.f32.mrf.mxu0 }
  0xeb   : > { %v995_v23 = vpop.f32.mrf.mxu3 }
  0xec   : > { %v1032_v36 = vadd.f32 %v995_v23, %v881_v61  ;;  %v664_v45 = vpop.f32.mrf.mxu1 }
  0xed   : > { %2759 = vmatmul.msk.bf16.gmra.mxu0 %vm500_vm3, %v2178_v3  ;;  %v665_v34 = vadd.f32 %v664_v45, %v3421_v8  ;;  %v2120_v3 = vsel %vm3229_vm7, %v2751_v9, %v2119_v43  ;;  %v1439_v43 = vsel %vm3229_vm7, %v1437_v1, %v1438_v49  ;;  %v1855_v45 = vrot.slane %v1853_v11, 5 }
  0xee   : > { %v3600_v8 = vadd.f32 %v1329_v31, %v1032_v36  ;;  %v2165_v21 = vunpack.c.l.b16 %v2120_v3  ;;  %v1851_v36 = vrot.slane %v1850_v47, 4  ;;  %v1476_v9 = vunpack.c.l.b16 %v1436_v42 }
  0xef   : > { %v846_v53 = vpop.f32.mrf.mxu2  ;;  %2645 = vmatmul.msk.bf16.gmra.mxu1 %vm500_vm3, %v1488_v19  ;;  %v1841_v19 = vrot.slane %v1840_v7, 4  ;;  %v1477_v39 = vunpack.c.l.b16 %v1439_v43  ;;  %v1442_v3 = vrot.slane %v3350_v18, 5  ;;  %v1445_v11 = vrot.slane %v3364_v44, 5  ;;  %v2788_v43 = vld [vmem:[%s3072_s16 + $0x3c] sm:$0xff] }
  0xf0   : > { %v882_v56 = vadd.f32 %v846_v53, %v662_v52  ;;  %v1973_v52 = vpack.c.b16 %v1960_v29, %v1959_v50  ;;  %v2179_v4 = vpack.c.b16 %v2166_v25, %v2165_v21  ;;  %v1856_v49 = vsel %vm3106_vm4, %v1851_v36, %v1855_v45  ;;  %v3625_v50 = vld [vmem:[%s3072_s16 + $0x4c] sm:$0xf] }
  0xf1   : > { %v2752_v53 = vrot.slane %v2744_v40, 9  ;;  %v1489_v63 = vpack.c.b16 %v1477_v39, %v1476_v9  ;;  %v1858_v29 = vshrl.u32 %v2720_v5, 16  ;;  %v1867_v7 = vshll.u32 %v3625_v50, 16 }
  0xf2   : > { %v1331_v61 = vpop.f32.mrf.mxu0  ;;  %v1871_v47 = vshrl.u32 %v3625_v50, 16  ;;  %v2638_v21 = vrot.slane %v2630_v2, 9  ;;  %v1444_v25 = vrot.slane %v1442_v3, 4 }
  0xf3   : > { %v997_v10 = vpop.f32.mrf.mxu3  ;;  %v2127_v18 = vsel %vm3229_vm7, %v2752_v53, %v2126_v27 }
  0xf4   : > { %v1033_v31 = vadd.f32 %v997_v10, %v882_v56  ;;  %2702 = vmatmul.msk.bf16.gmra.mxu2 %vm500_vm3, %v2787_v59  ;;  %v666_v13 = vpop.f32.mrf.mxu1  ;;  %v2128_v59 = vrot.slane %v2126_v27, 4  ;;  %v1873_v36 = vrot.slane %v1871_v47, 4  ;;  %v2167_v40 = vunpack.c.l.b16 %v2127_v18 }
  0xf5   : > { %v667_v23 = vadd.f32 %v666_v13, %v3441_v46  ;;  %v1846_v46 = vsel %vm3106_vm4, %v1841_v19, %v1845_v48  ;;  %v1869_v19 = vrot.slane %v1867_v7, 5  ;;  %v2133_v7 = vrot.slane %v3625_v50, 5 }
  0xf6   : > { %v3618_v20 = vadd.f32 %v1331_v61, %v1033_v31  ;;  %v1861_v61 = vshll.u32 %v2720_v5, 16  ;;  %v1961_v10 = vunpack.c.l.b16 %v1846_v46  ;;  %v1449_v50 = vrot.slane %v3376_v60, 5 }
  0xf7   : > { %v849_v33 = vpop.f32.mrf.mxu2 }
  0xf8   : > { %2735 = vmatmul.msk.bf16.gmra.mxu3 %vm500_vm3, %v1973_v52  ;;  %v883_v16 = vadd.f32 %v849_v33, %v665_v34  ;;  %v2129_v34 = vrot.slane %v3598_v62, 5  ;;  %v1962_v62 = vunpack.c.l.b16 %v1856_v49  ;;  %v1863_v44 = vrot.slane %v1861_v61, 5  ;;  %v3644_v33 = vld [vmem:[%s3072_s16 + $0x50] sm:$0x1] }
  0xf9   : > { %v1874_v49 = vor.u32 %v1873_v36, %v1869_v19  ;;  %v1877_v53 = vshll.u32 %v3644_v33, 16  ;;  %v2136_v36 = vrot.slane %v3644_v33, 5  ;;  %v1451_v33 = vrot.slane %v1449_v50, 4 }
  0xfa   : > { %v1334_v28 = vpop.f32.mrf.mxu0  ;;  %v2130_v52 = vsel %vm3229_vm7, %v2128_v59, %v2129_v34  ;;  %v1974_v39 = vpack.c.b16 %v1962_v62, %v1961_v10  ;;  %v2723_v34 = vld [vmem:[%s3072_s16 + $0x54] sm:$0xf] }
  0xfb   : > { %v1000_v56 = vpop.f32.mrf.mxu3  ;;  %v2168_v27 = vunpack.c.l.b16 %v2130_v52  ;;  %v1875_v61 = vrot.slane %v1874_v49, 4  ;;  %v1879_v2 = vrot.slane %v1877_v53, 5  ;;  %v1882_v10 = vshrl.u32 %v2723_v34, 16 }
  0xfc   : > { %v1034_v0 = vadd.f32 %v1000_v56, %v883_v16  ;;  %v669_v1 = vpop.f32.mrf.mxu1  ;;  %v1885_v62 = vshll.u32 %v2723_v34, 16 }
  0xfd   : > { %2760 = vmatmul.msk.bf16.gmra.mxu0 %vm500_vm3, %v2179_v4  ;;  %v670_v48 = vadd.f32 %v669_v1, %v3468_v57  ;;  %v1860_v57 = vrot.slane %v1858_v29, 4  ;;  %v1446_v4 = vsel %vm3229_vm7, %v1444_v25, %v1445_v11  ;;  %v3655_v29 = vld [vmem:[%s3072_s16 + $0x58] sm:$0xf]  ;;  %v2745_v11 = vld [vmem:[%s3072_s16 + $0x48] sm:$0xe] }
  0xfe   : > { %v3640_v13 = vadd.f32 %v1334_v28, %v1034_v0  ;;  %v1479_v59 = vunpack.c.l.b16 %v1446_v4  ;;  %v2180_v0 = vpack.c.b16 %v2168_v27, %v2167_v40  ;;  %v1895_v18 = vshrl.u32 %v3655_v29, 16 }
  0xff   : > { %v851_v31 = vpop.f32.mrf.mxu2  ;;  %2646 = vmatmul.msk.bf16.gmra.mxu1 %vm500_vm3, %v1489_v63  ;;  %v1864_v28 = vor.u32 %v1863_v44, %v1860_v57  ;;  %v2753_v25 = vrot.slane %v2745_v11, 9  ;;  %v2135_v44 = vrot.slane %v2133_v7, 4 }
 0x100   : > { %v884_v42 = vadd.f32 %v851_v31, %v667_v23  ;;  %v1443_v23 = vsel %vm3229_vm7, %v2638_v21, %v1442_v3  ;;  %v1891_v31 = vshll.u32 %v3655_v29, 16  ;;  %v1880_v21 = vsel %vm3106_vm4, %v1875_v61, %v1879_v2 }
 0x101   : > { %v1478_v63 = vunpack.c.l.b16 %v1443_v23  ;;  %v1865_v3 = vrot.slane %v1864_v28, 4  ;;  %v1897_v27 = vrot.slane %v1895_v18, 4  ;;  %v2789_v28 = vld [vmem:[%s3072_s16 + $0x48] sm:$0xff]  ;;  %v1964_v49 = vunpack.c.l.b16 %v1880_v21  ;;  %v2726_v21 = vld [vmem:[%s3072_s16 + $0x60] sm:$0xf] }
 0x102   : > { %v1336_v45 = vpop.f32.mrf.mxu0  ;;  %v1893_v40 = vrot.slane %v1891_v31, 5 }
 0x103   : > { %v1002_v9 = vpop.f32.mrf.mxu3  ;;  %v1490_v57 = vpack.c.b16 %v1479_v59, %v1478_v63 }
 0x104   : > { %v1035_v16 = vadd.f32 %v1002_v9, %v884_v42  ;;  %2703 = vmatmul.msk.bf16.gmra.mxu2 %vm500_vm3, %v2788_v43  ;;  %v671_v5 = vpop.f32.mrf.mxu1  ;;  %v1870_v43 = vsel %vm3106_vm4, %v1865_v3, %v1869_v19  ;;  %v1884_v9 = vrot.slane %v1882_v10, 4  ;;  %v1452_v19 = vrot.slane %v3391_v32, 5 }
 0x105   : > { %v672_v46 = vadd.f32 %v671_v5, %v3490_v37  ;;  %v1963_v60 = vunpack.c.l.b16 %v1870_v43  ;;  %v3675_v5 = vld [vmem:[%s3072_s16 + $0x5c] sm:$0x1]  ;;  %v2137_v32 = vsel %vm3229_vm7, %v2135_v44, %v2136_v36  ;;  %v1898_v34 = vor.u32 %v1897_v27, %v1893_v40 }
 0x106   : > { %v3659_v37 = vadd.f32 %v1336_v45, %v1035_v16  ;;  %v2631_v45 = vld [vmem:[%s3072_s16 + $0x48] sm:$0xe]  ;;  %v2170_v11 = vunpack.c.l.b16 %v2137_v32 }
 0x107   : > { %v854_v56 = vpop.f32.mrf.mxu2  ;;  %v2639_v53 = vrot.slane %v2631_v45, 9  ;;  %v1899_v31 = vrot.slane %v1898_v34, 4  ;;  %v2746_v45 = vld [vmem:[%s3072_s16 + $0x54] sm:$0xe]  ;;  %v2143_v34 = vrot.slane %v3675_v5, 5 }
 0x108   : > { %2736 = vmatmul.msk.bf16.gmra.mxu3 %vm500_vm3, %v1974_v39  ;;  %v885_v1 = vadd.f32 %v854_v56, %v670_v48  ;;  %v1887_v39 = vrot.slane %v1885_v62, 5  ;;  %v2134_v56 = vsel %vm3229_vm7, %v2753_v25, %v2133_v7  ;;  %v1453_v7 = vsel %vm3229_vm7, %v1451_v33, %v1452_v19  ;;  %v3694_v25 = vld [vmem:[%s3072_s16 + $0x64] sm:$0xf] }
 0x109   : > { %v1450_v2 = vsel %vm3229_vm7, %v2639_v53, %v1449_v50  ;;  %v1906_v19 = vshrl.u32 %v2726_v21, 16  ;;  %v1919_v53 = vshrl.u32 %v3694_v25, 16 }
 0x10a   : > { %v1339_v47 = vpop.f32.mrf.mxu0  ;;  %v1888_v59 = vor.u32 %v1887_v39, %v1884_v9  ;;  %v2140_v9 = vrot.slane %v3655_v29, 5  ;;  %v2632_v29 = vld [vmem:[%s3072_s16 + $0x54] sm:$0xe] }
 0x10b   : > { %v1005_v52 = vpop.f32.mrf.mxu3 }
 0x10c   : > { %v1036_v42 = vadd.f32 %v1005_v52, %v885_v1  ;;  %v674_v48 = vpop.f32.mrf.mxu1  ;;  %v1889_v62 = vrot.slane %v1888_v59, 4  ;;  %v2142_v59 = vrot.slane %v2140_v9, 4 }
 0x10d   : > { %2761 = vmatmul.msk.bf16.gmra.mxu0 %vm500_vm3, %v2180_v0  ;;  %v1901_v0 = vshll.u32 %v3675_v5, 16  ;;  %v675_v10 = vadd.f32 %v674_v48, %v3445_v15 }
 0x10e   : > { %v3677_v23 = vadd.f32 %v1339_v47, %v1036_v42  ;;  %v2169_v47 = vunpack.c.l.b16 %v2134_v56  ;;  %v1481_v42 = vunpack.c.l.b16 %v1453_v7  ;;  %v1894_v15 = vsel %vm3106_vm4, %v1889_v62, %v1893_v40 }
 0x10f   : > { %v856_v16 = vpop.f32.mrf.mxu2  ;;  %2647 = vmatmul.msk.bf16.gmra.mxu1 %vm500_vm3, %v1490_v57  ;;  %v1903_v18 = vrot.slane %v1901_v0, 5  ;;  %v1480_v57 = vunpack.c.l.b16 %v1450_v2  ;;  %v1459_v40 = vrot.slane %v3418_v6, 5  ;;  %v1965_v33 = vunpack.c.l.b16 %v1894_v15  ;;  %v2790_v2 = vld [vmem:[%s3072_s16 + $0x54] sm:$0xff] }
 0x110   : > { %v886_v4 = vadd.f32 %v856_v16, %v672_v46  ;;  %v1975_v46 = vpack.c.b16 %v1964_v49, %v1963_v60  ;;  %v2181_v50 = vpack.c.b16 %v2170_v11, %v2169_v47  ;;  %v1909_v16 = vshll.u32 %v2726_v21, 16  ;;  %v3717_v11 = vld [vmem:[%s3072_s16 + $0x68] sm:$0x1] }
 0x111   : > { %v1904_v48 = vsel %vm3106_vm4, %v1899_v31, %v1903_v18  ;;  %v1491_v27 = vpack.c.b16 %v1481_v42, %v1480_v57  ;;  %v1915_v60 = vshll.u32 %v3694_v25, 16  ;;  %v1456_v49 = vrot.slane %v3403_v41, 5 }
 0x112   : > { %v1341_v63 = vpop.f32.mrf.mxu0  ;;  %v2754_v56 = vrot.slane %v2746_v45, 9  ;;  %v1966_v32 = vunpack.c.l.b16 %v1904_v48  ;;  %v1908_v41 = vrot.slane %v1906_v19, 4  ;;  %v2640_v7 = vrot.slane %v2632_v29, 9  ;;  %v3737_v29 = vld [vmem:[%s3072_s16 + $0x70] sm:$0xf] }
 0x113   : > { %v1007_v1 = vpop.f32.mrf.mxu3  ;;  %v1458_v47 = vrot.slane %v1456_v49, 4  ;;  %v2144_v5 = vsel %vm3229_vm7, %v2142_v59, %v2143_v34 }
 0x114   : > { %v1037_v3 = vadd.f32 %v1007_v1, %v886_v4  ;;  %2704 = vmatmul.msk.bf16.gmra.mxu2 %vm500_vm3, %v2789_v28  ;;  %v676_v61 = vpop.f32.mrf.mxu1  ;;  %v1911_v1 = vrot.slane %v1909_v16, 5  ;;  %v1976_v31 = vpack.c.b16 %v1966_v32, %v1965_v33  ;;  %v2172_v15 = vunpack.c.l.b16 %v2144_v5 }
 0x115   : > { %v1460_v21 = vsel %vm3229_vm7, %v1458_v47, %v1459_v40  ;;  %v2147_v33 = vrot.slane %v3694_v25, 5  ;;  %v2633_v25 = vld [vmem:[%s3072_s16 + $0x60] sm:$0xe] }
 0x116   : > { %v3696_v44 = vadd.f32 %v1341_v63, %v1037_v3  ;;  %v677_v63 = vadd.f32 %v676_v61, %v3472_v12  ;;  %v1917_v3 = vrot.slane %v1915_v60, 5  ;;  %v2141_v61 = vsel %vm3229_vm7, %v2754_v56, %v2140_v9  ;;  %v2729_v56 = vld [vmem:[%s3072_s16 + $0x6c] sm:$0xf] }
 0x117   : > { %v859_v52 = vpop.f32.mrf.mxu2  ;;  %v1912_v18 = vor.u32 %v1911_v1, %v1908_v41  ;;  %v1463_v41 = vrot.slane %v3433_v51, 5  ;;  %v1930_v1 = vshrl.u32 %v2729_v56, 16  ;;  %v2149_v47 = vrot.slane %v2147_v33, 4 }
 0x118   : > { %2737 = vmatmul.msk.bf16.gmra.mxu3 %vm500_vm3, %v1975_v46  ;;  %v887_v43 = vadd.f32 %v859_v52, %v675_v10  ;;  %v1921_v10 = vrot.slane %v1919_v53, 4  ;;  %v1925_v52 = vshll.u32 %v3717_v11, 16 }
 0x11a   : > { %v1344_v36 = vpop.f32.mrf.mxu0  ;;  %v1927_v60 = vrot.slane %v1925_v52, 5 }
 0x11b   : > { %v1010_v39 = vpop.f32.mrf.mxu3 }
 0x11c   : > { %v1038_v4 = vadd.f32 %v1010_v39, %v887_v43  ;;  %v679_v28 = vpop.f32.mrf.mxu1  ;;  %v1457_v43 = vsel %vm3229_vm7, %v2640_v7, %v1456_v49  ;;  %v1483_v39 = vunpack.c.l.b16 %v1460_v21  ;;  %v2747_v49 = vld [vmem:[%s3072_s16 + $0x60] sm:$0xe]  ;;  %v1943_v7 = vshrl.u32 %v3737_v29, 16 }
 0x11d   : > { %2762 = vmatmul.msk.bf16.gmra.mxu0 %vm500_vm3, %v2181_v50  ;;  %v1922_v50 = vor.u32 %v1921_v10, %v1917_v3  ;;  %v680_v48 = vadd.f32 %v679_v28, %v3496_v17  ;;  %v1482_v9 = vunpack.c.l.b16 %v1457_v43  ;;  %v2150_v10 = vrot.slane %v3717_v11, 5 }
 0x11e   : > { %v3713_v6 = vadd.f32 %v1344_v36, %v1038_v4  ;;  %v2171_v36 = vunpack.c.l.b16 %v2141_v61  ;;  %v1466_v61 = vrot.slane %v3455_v55, 5  ;;  %v1945_v21 = vrot.slane %v1943_v7, 4 }
 0x11f   : > { %v861_v0 = vpop.f32.mrf.mxu2  ;;  %2648 = vmatmul.msk.bf16.gmra.mxu1 %vm500_vm3, %v1491_v27  ;;  %v1913_v27 = vrot.slane %v1912_v18, 4  ;;  %v1923_v16 = vrot.slane %v1922_v50, 4  ;;  %v1492_v28 = vpack.c.b16 %v1483_v39, %v1482_v9  ;;  %v2791_v18 = vld [vmem:[%s3072_s16 + $0x60] sm:$0xff]  ;;  %v2151_v55 = vsel %vm3229_vm7, %v2149_v47, %v2150_v10 }
 0x120   : > { %v888_v46 = vadd.f32 %v861_v0, %v677_v63  ;;  %v2182_v4 = vpack.c.b16 %v2172_v15, %v2171_v36  ;;  %v2755_v0 = vrot.slane %v2747_v49, 9  ;;  %v2731_v36 = vld [vmem:[%s3072_s16 + $0x74] sm:$0x1] }
 0x121   : > { %v1918_v63 = vsel %vm3106_vm4, %v1913_v27, %v1917_v3  ;;  %v1928_v34 = vsel %vm3106_vm4, %v1923_v16, %v1927_v60  ;;  %v2174_v16 = vunpack.c.l.b16 %v2151_v55  ;;  %v1949_v49 = vshll.u32 %v2731_v36, 16 }
 0x122   : > { %v1346_v12 = vpop.f32.mrf.mxu0  ;;  %v1967_v5 = vunpack.c.l.b16 %v1918_v63  ;;  %v2148_v52 = vsel %vm3229_vm7, %v2755_v0, %v2147_v33 }
 0x123   : > { %v1012_v62 = vpop.f32.mrf.mxu3 }
 0x124   : > { %v1039_v57 = vadd.f32 %v1012_v62, %v888_v46  ;;  %2705 = vmatmul.msk.bf16.gmra.mxu2 %vm500_vm3, %v2790_v2  ;;  %v681_v42 = vpop.f32.mrf.mxu1  ;;  %v1933_v46 = vshll.u32 %v2729_v56, 16  ;;  %v1939_v2 = vshll.u32 %v3737_v29, 16  ;;  %v1968_v62 = vunpack.c.l.b16 %v1928_v34 }
 0x125   : > { %v682_v3 = vadd.f32 %v681_v42, %v3519_v38  ;;  %v1465_v38 = vrot.slane %v1463_v41, 4  ;;  %v1932_v42 = vrot.slane %v1930_v1, 4  ;;  %v2748_v1 = vld [vmem:[%s3072_s16 + $0x6c] sm:$0xe] }
 0x126   : > { %v3732_v53 = vadd.f32 %v1346_v12, %v1039_v57  ;;  %v2641_v57 = vrot.slane %v2633_v25, 9  ;;  %v1935_v43 = vrot.slane %v1933_v46, 5  ;;  %v1941_v11 = vrot.slane %v1939_v2, 5 }
 0x127   : > { %v864_v45 = vpop.f32.mrf.mxu2  ;;  %v1977_v9 = vpack.c.b16 %v1968_v62, %v1967_v5  ;;  %v2154_v46 = vrot.slane %v3737_v29, 5  ;;  %v2756_v10 = vrot.slane %v2748_v1, 9  ;;  %v2157_v5 = vrot.slane %v2731_v36, 5 }
 0x128   : > { %2738 = vmatmul.msk.bf16.gmra.mxu3 %vm500_vm3, %v1976_v31  ;;  %v889_v19 = vadd.f32 %v864_v45, %v680_v48  ;;  %v2173_v48 = vunpack.c.l.b16 %v2148_v52  ;;  %v1464_v27 = vsel %vm3229_vm7, %v2641_v57, %v1463_v41  ;;  %v1936_v60 = vor.u32 %v1935_v43, %v1932_v42 }
 0x129   : > { %v1951_v41 = vrot.slane %v1949_v49, 5  ;;  %v2155_v42 = vsel %vm3229_vm7, %v2756_v10, %v2154_v46 }
 0x12a   : > { %v1349_v40 = vpop.f32.mrf.mxu0  ;;  %v1937_v34 = vrot.slane %v1936_v60, 4 }
 0x12b   : > { %v1015_v17 = vpop.f32.mrf.mxu3 }
 0x12c   : > { %v1040_v32 = vadd.f32 %v1015_v17, %v889_v19  ;;  %v684_v59 = vpop.f32.mrf.mxu1  ;;  %v1467_v19 = vsel %vm3229_vm7, %v1465_v38, %v1466_v61  ;;  %v1484_v17 = vunpack.c.l.b16 %v1464_v27 }
 0x12d   : > { %2763 = vmatmul.msk.bf16.gmra.mxu0 %vm500_vm3, %v2182_v4  ;;  %v1946_v4 = vor.u32 %v1945_v21, %v1941_v11 }
 0x12e   : > { %v3750_v12 = vadd.f32 %v1349_v40, %v1040_v32  ;;  %v685_v40 = vadd.f32 %v684_v59, %v3452_v54  ;;  %v2183_v32 = vpack.c.b16 %v2174_v16, %v2173_v48 }
 0x12f   : > { %v866_v51 = vpop.f32.mrf.mxu2  ;;  %2649 = vmatmul.msk.bf16.gmra.mxu1 %vm500_vm3, %v1492_v28  ;;  %v1485_v28 = vunpack.c.l.b16 %v1467_v19  ;;  %v1947_v0 = vrot.slane %v1946_v4, 4 }
 0x130   : > { %v890_v31 = vadd.f32 %v866_v51, %v682_v3  ;;  %v1942_v3 = vsel %vm3106_vm4, %v1937_v34, %v1941_v11  ;;  %v2156_v51 = vrot.slane %v2154_v46, 4 }
 0x131   : > { %v1493_v7 = vpack.c.b16 %v1485_v28, %v1484_v17  ;;  %v1952_v47 = vsel %vm3106_vm4, %v1947_v0, %v1951_v41  ;;  %v1969_v52 = vunpack.c.l.b16 %v1942_v3 }
 0x132   : > { %v1351_v50 = vpop.f32.mrf.mxu0  ;;  %v1970_v57 = vunpack.c.l.b16 %v1952_v47  ;;  %v2158_v26 = vsel %vm3229_vm7, %v2156_v51, %v2157_v5 }
 0x133   : > { %v1017_v15 = vpop.f32.mrf.mxu3  ;;  %v2176_v55 = vunpack.c.l.b16 %v2158_v26 }
 0x134   : > { %v1041_v45 = vadd.f32 %v1017_v15, %v890_v31  ;;  %2706 = vmatmul.msk.bf16.gmra.mxu2 %vm500_vm3, %v2791_v18  ;;  %v686_v39 = vpop.f32.mrf.mxu1  ;;  %v2792_v18 = vld [vmem:[%s3072_s16 + $0x6c] sm:$0xff]  ;;  %v1978_v11 = vpack.c.b16 %v1970_v57, %v1969_v52 }
 0x135   : > { %v687_v61 = vadd.f32 %v686_v39, %v3481_v35 }
 0x136   : > { %v3766_v33 = vadd.f32 %v1351_v50, %v1041_v45  ;;  %v2175_v50 = vunpack.c.l.b16 %v2155_v42 }
 0x137   : > { %v869_v56 = vpop.f32.mrf.mxu2 }
 0x138   : > { %2739 = vmatmul.msk.bf16.gmra.mxu3 %vm500_vm3, %v1977_v9  ;;  %v891_v63 = vadd.f32 %v869_v56, %v685_v40  ;;  %v2184_v9 = vpack.c.b16 %v2176_v55, %v2175_v50 }
 0x13a   : > { %v1354_v25 = vpop.f32.mrf.mxu0 }
 0x13b   : > { %v1020_v2 = vpop.f32.mrf.mxu3 }
 0x13c   : > { %v1042_v54 = vadd.f32 %v1020_v2, %v891_v63  ;;  %v689_v59 = vpop.f32.mrf.mxu1 }
 0x13d   : > { %2764 = vmatmul.msk.bf16.gmra.mxu0 %vm500_vm3, %v2183_v32  ;;  %v690_v36 = vadd.f32 %v689_v59, %v3509_v22 }
 0x13e   : > { %v3777_v62 = vadd.f32 %v1354_v25, %v1042_v54  ;;  %v3802_v54 = vld [vmem:[%s3933_s2] ss:$0 sm:$0xff] }
 0x13f   : > { %v871_v29 = vpop.f32.mrf.mxu2  ;;  %2650 = vmatmul.msk.bf16.gmra.mxu1 %vm500_vm3, %v1493_v7 }
 0x140   : > { %v892_v31 = vadd.f32 %v871_v29, %v687_v61 }
 0x142   : > { %v1356_v38 = vpop.f32.mrf.mxu0 }
 0x143   : > { %v1022_v43 = vpop.f32.mrf.mxu3 }
 0x144   : > { %v1043_v35 = vadd.f32 %v1022_v43, %v892_v31  ;;  %2707 = vmatmul.msk.bf16.gmra.mxu2 %vm500_vm3, %v2792_v18  ;;  %v691_v21 = vpop.f32.mrf.mxu1 }
 0x145   : > { %v692_v60 = vadd.f32 %v691_v21, %v3531_v30 }
 0x146   : > { %v3787_v15 = vadd.f32 %v1356_v38, %v1043_v35 }
 0x147   : > { %v874_v48 = vpop.f32.mrf.mxu2 }
 0x148   : > { %2740 = vmatmul.msk.bf16.gmra.mxu3 %vm500_vm3, %v1978_v11  ;;  %v893_v45 = vadd.f32 %v874_v48, %v690_v36 }
 0x14a   : > { %v1359_v39 = vpop.f32.mrf.mxu0 }
 0x14b   : > { %v1025_v24 = vpop.f32.mrf.mxu3 }
 0x14c   : > { %v1044_v27 = vadd.f32 %v1025_v24, %v893_v45  ;;  %v1530_v19 = vpop.f32.mrf.mxu1 }
 0x14d   : > { %2765 = vmatmul.msk.bf16.gmra.mxu0 %vm500_vm3, %v2184_v9  ;;  %v1570_v16 = vadd.f32 %v1530_v19, %v3562_v14 }
 0x14e   : > { %v3793_v4 = vadd.f32 %v1359_v39, %v1044_v27 }
 0x14f   : > { %v876_v22 = vpop.f32.mrf.mxu2 }
 0x150   : > { %v894_v49 = vadd.f32 %v876_v22, %v692_v60 }
 0x152   : > { %v1361_v40 = vpop.f32.mrf.mxu0 }
 0x153   : > { %v1027_v56 = vpop.f32.mrf.mxu3 }
 0x154   : > { %v1045_v17 = vadd.f32 %v1027_v56, %v894_v49  ;;  %v1532_v28 = vpop.f32.mrf.mxu1 }
 0x155   : > { %v1571_v63 = vadd.f32 %v1532_v28, %v3582_v58 }
 0x156   : > { %v3796_v32 = vadd.f32 %v1361_v40, %v1045_v17 }
 0x157   : > { %v1681_v34 = vpop.f32.mrf.mxu2 }
 0x158   : > { %v1721_v0 = vadd.f32 %v1681_v34, %v1570_v16 }
 0x15a   : > { %v2221_v41 = vpop.f32.mrf.mxu0 }
 0x15b   : > { %v2015_v25 = vpop.f32.mrf.mxu3 }
 0x15c   : > { %v2055_v1 = vadd.f32 %v2015_v25, %v1721_v0  ;;  %v1535_v14 = vpop.f32.mrf.mxu1 }
 0x15d   : > { %v1572_v30 = vadd.f32 %v1535_v14, %v3600_v8 }
 0x15e   : > { %v2261_v46 = vadd.f32 %v2221_v41, %v2055_v1 }
 0x15f   : > { %v1683_v2 = vpop.f32.mrf.mxu2 }
 0x160   : > { %v1722_v7 = vadd.f32 %v1683_v2, %v1571_v63  ;;  %v2281_v61 = vadd.f32 %v3802_v54, %v2261_v46 }
 0x162   : > { %v2223_v59 = vpop.f32.mrf.mxu0  ;;  %v2297_v31 = vmax.f32 %v2281_v61, 0.0 }
 0x163   : > { %v2017_v58 = vpop.f32.mrf.mxu3 }
 0x164   : > { %v2056_v3 = vadd.f32 %v2017_v58, %v1722_v7  ;;  %v1537_v47 = vpop.f32.mrf.mxu1 }
 0x165   : > { %v1573_v10 = vadd.f32 %v1537_v47, %v3618_v20 }
 0x166   : > { %v2262_v51 = vadd.f32 %v2223_v59, %v2056_v3 }
 0x167   : > { %v1686_v5 = vpop.f32.mrf.mxu2 }
 0x168   : > { %v2282_v8 = vadd.f32 %v3802_v54, %v2262_v51  ;;  %v1723_v29 = vadd.f32 %v1686_v5, %v1572_v30 }
 0x16a   : > { %v2298_v18 = vmax.f32 %v2282_v8, 0.0  ;;  %v2226_v52 = vpop.f32.mrf.mxu0 }
 0x16b   : > { %v2020_v57 = vpop.f32.mrf.mxu3 }
 0x16c   : > { %v2314_v38 = vadd.f32 %v2298_v18, %v2297_v31  ;;  %v2057_v42 = vadd.f32 %v2020_v57, %v1723_v29  ;;  %v1540_v26 = vpop.f32.mrf.mxu1 }
 0x16d   : > { %v1574_v43 = vadd.f32 %v1540_v26, %v3640_v13 }
 0x16e   : > { %v2263_v35 = vadd.f32 %v2226_v52, %v2057_v42 }
 0x16f   : > { %v1688_v11 = vpop.f32.mrf.mxu2 }
 0x170   : > { %v2283_v20 = vadd.f32 %v3802_v54, %v2263_v35  ;;  %v1724_v21 = vadd.f32 %v1688_v11, %v1573_v10 }
 0x172   : > { %v2299_v50 = vmax.f32 %v2283_v20, 0.0  ;;  %v2228_v55 = vpop.f32.mrf.mxu0 }
 0x173   : > { %v2022_v36 = vpop.f32.mrf.mxu3 }
 0x174   : > { %v2315_v48 = vadd.f32 %v2314_v38, %v2299_v50  ;;  %v2058_v45 = vadd.f32 %v2022_v36, %v1724_v21  ;;  %v1542_v9 = vpop.f32.mrf.mxu1 }
 0x175   : > { %v1575_v17 = vadd.f32 %v1542_v9, %v3659_v37 }
 0x176   : > { %v2264_v39 = vadd.f32 %v2228_v55, %v2058_v45 }
 0x177   : > { %v1691_v24 = vpop.f32.mrf.mxu2 }
 0x178   : > { %v2284_v27 = vadd.f32 %v3802_v54, %v2264_v39  ;;  %v1725_v19 = vadd.f32 %v1691_v24, %v1574_v43 }
 0x17a   : > { %v2300_v16 = vmax.f32 %v2284_v27, 0.0  ;;  %v2231_v60 = vpop.f32.mrf.mxu0 }
 0x17b   : > { %v2025_v22 = vpop.f32.mrf.mxu3 }
 0x17c   : > { %v2316_v13 = vadd.f32 %v2315_v48, %v2300_v16  ;;  %v2059_v49 = vadd.f32 %v2025_v22, %v1725_v19  ;;  %v1545_v40 = vpop.f32.mrf.mxu1 }
 0x17d   : > { %v1576_v2 = vadd.f32 %v1545_v40, %v3677_v23 }
 0x17e   : > { %v2265_v56 = vadd.f32 %v2231_v60, %v2059_v49 }
 0x17f   : > { %v1693_v28 = vpop.f32.mrf.mxu2 }
 0x180   : > { %v2285_v63 = vadd.f32 %v3802_v54, %v2265_v56  ;;  %v1726_v34 = vadd.f32 %v1693_v28, %v1575_v17 }
 0x182   : > { %v2301_v0 = vmax.f32 %v2285_v63, 0.0  ;;  %v2233_v41 = vpop.f32.mrf.mxu0 }
 0x183   : > { %v2027_v25 = vpop.f32.mrf.mxu3 }
 0x184   : > { %v2317_v1 = vadd.f32 %v2316_v13, %v2301_v0  ;;  %v2060_v14 = vadd.f32 %v2027_v25, %v1726_v34  ;;  %v1547_v30 = vpop.f32.mrf.mxu1 }
 0x185   : > { %v1577_v8 = vadd.f32 %v1547_v30, %v3696_v44 }
 0x186   : > { %v2266_v46 = vadd.f32 %v2233_v41, %v2060_v14 }
 0x187   : > { %v1696_v7 = vpop.f32.mrf.mxu2 }
 0x188   : > { %v2286_v59 = vadd.f32 %v3802_v54, %v2266_v46  ;;  %v1727_v58 = vadd.f32 %v1696_v7, %v1576_v2 }
 0x18a   : > { %v2302_v3 = vmax.f32 %v2286_v59, 0.0  ;;  %v2236_v47 = vpop.f32.mrf.mxu0 }
 0x18b   : > { %v2030_v37 = vpop.f32.mrf.mxu3 }
 0x18c   : > { %v2318_v10 = vadd.f32 %v2317_v1, %v2302_v3  ;;  %v2061_v61 = vadd.f32 %v2030_v37, %v1727_v58  ;;  %v1550_v51 = vpop.f32.mrf.mxu1 }
 0x18d   : > { %v1578_v35 = vadd.f32 %v1550_v51, %v3713_v6 }
 0x18e   : > { %v2267_v5 = vadd.f32 %v2236_v47, %v2061_v61 }
 0x18f   : > { %v1698_v29 = vpop.f32.mrf.mxu2 }
 0x190   : > { %v2287_v31 = vadd.f32 %v3802_v54, %v2267_v5  ;;  %v1728_v18 = vadd.f32 %v1698_v29, %v1577_v8 }
 0x192   : > { %v2303_v52 = vmax.f32 %v2287_v31, 0.0  ;;  %v2238_v57 = vpop.f32.mrf.mxu0 }
 0x193   : > { %v2032_v23 = vpop.f32.mrf.mxu3 }
 0x194   : > { %v2319_v38 = vadd.f32 %v2318_v10, %v2303_v52  ;;  %v2062_v42 = vadd.f32 %v2032_v23, %v1728_v18  ;;  %v1552_v26 = vpop.f32.mrf.mxu1 }
 0x195   : > { %v1579_v39 = vadd.f32 %v1552_v26, %v3732_v53 }
 0x196   : > { %v2268_v43 = vadd.f32 %v2238_v57, %v2062_v42 }
 0x197   : > { %v1701_v11 = vpop.f32.mrf.mxu2 }
 0x198   : > { %v2288_v20 = vadd.f32 %v3802_v54, %v2268_v43  ;;  %v1729_v21 = vadd.f32 %v1701_v11, %v1578_v35 }
 0x19a   : > { %v2304_v50 = vmax.f32 %v2288_v20, 0.0  ;;  %v2241_v55 = vpop.f32.mrf.mxu0 }
 0x19b   : > { %v2035_v44 = vpop.f32.mrf.mxu3 }
 0x19c   : > { %v2320_v36 = vadd.f32 %v2319_v38, %v2304_v50  ;;  %v2063_v48 = vadd.f32 %v2035_v44, %v1729_v21  ;;  %v1555_v45 = vpop.f32.mrf.mxu1 }
 0x19d   : > { %v1580_v56 = vadd.f32 %v1555_v45, %v3750_v12 }
 0x19e   : > { %v2269_v9 = vadd.f32 %v2241_v55, %v2063_v48 }
 0x19f   : > { %v1703_v24 = vpop.f32.mrf.mxu2 }
 0x1a0   : > { %v2289_v27 = vadd.f32 %v3802_v54, %v2269_v9  ;;  %v1730_v19 = vadd.f32 %v1703_v24, %v1579_v39 }
 0x1a2   : > { %v2305_v16 = vmax.f32 %v2289_v27, 0.0  ;;  %v2243_v60 = vpop.f32.mrf.mxu0 }
 0x1a3   : > { %v2037_v6 = vpop.f32.mrf.mxu3 }
 0x1a4   : > { %v2321_v22 = vadd.f32 %v2320_v36, %v2305_v16  ;;  %v2064_v13 = vadd.f32 %v2037_v6, %v1730_v19  ;;  %v1557_v49 = vpop.f32.mrf.mxu1 }
 0x1a5   : > { %v1581_v30 = vadd.f32 %v1557_v49, %v3766_v33 }
 0x1a6   : > { %v2270_v40 = vadd.f32 %v2243_v60, %v2064_v13 }
 0x1a7   : > { %v1706_v17 = vpop.f32.mrf.mxu2 }
 0x1a8   : > { %v2290_v28 = vadd.f32 %v3802_v54, %v2270_v40  ;;  %v1731_v63 = vadd.f32 %v1706_v17, %v1580_v56 }
 0x1aa   : > { %v2306_v34 = vmax.f32 %v2290_v28, 0.0  ;;  %v2246_v0 = vpop.f32.mrf.mxu0 }
 0x1ab   : > { %v2040_v53 = vpop.f32.mrf.mxu3 }
 0x1ac   : > { %v2322_v41 = vadd.f32 %v2321_v22, %v2306_v34  ;;  %v2065_v25 = vadd.f32 %v2040_v53, %v1731_v63  ;;  %v1560_v1 = vpop.f32.mrf.mxu1 }
 0x1ad   : > { %v1582_v10 = vadd.f32 %v1560_v1, %v3777_v62 }
 0x1ae   : > { %v2271_v14 = vadd.f32 %v2246_v0, %v2065_v25 }
 0x1af   : > { %v1708_v46 = vpop.f32.mrf.mxu2 }
 0x1b0   : > { %v2291_v2 = vadd.f32 %v3802_v54, %v2271_v14  ;;  %v1732_v7 = vadd.f32 %v1708_v46, %v1581_v30 }
 0x1b2   : > { %v2307_v59 = vmax.f32 %v2291_v2, 0.0  ;;  %v2248_v58 = vpop.f32.mrf.mxu0 }
 0x1b3   : > { %v2042_v12 = vpop.f32.mrf.mxu3 }
 0x1b4   : > { %v2323_v3 = vadd.f32 %v2322_v41, %v2307_v59  ;;  %v2066_v47 = vadd.f32 %v2042_v12, %v1732_v7  ;;  %v1562_v61 = vpop.f32.mrf.mxu1 }
 0x1b5   : > { %v1583_v23 = vadd.f32 %v1562_v61, %v3787_v15 }
 0x1b6   : > { %v2272_v37 = vadd.f32 %v2248_v58, %v2066_v47 }
 0x1b7   : > { %v1711_v51 = vpop.f32.mrf.mxu2 }
 0x1b8   : > { %v2292_v5 = vadd.f32 %v3802_v54, %v2272_v37  ;;  %v1733_v8 = vadd.f32 %v1711_v51, %v1582_v10 }
 0x1ba   : > { %v2308_v29 = vmax.f32 %v2292_v5, 0.0  ;;  %v2251_v31 = vpop.f32.mrf.mxu0 }
 0x1bb   : > { %v2045_v33 = vpop.f32.mrf.mxu3 }
 0x1bc   : > { %v2324_v18 = vadd.f32 %v2323_v3, %v2308_v29  ;;  %v2067_v52 = vadd.f32 %v2045_v33, %v1733_v8  ;;  %v1565_v43 = vpop.f32.mrf.mxu1 }
 0x1bd   : > { %v1584_v55 = vadd.f32 %v1565_v43, %v3793_v4 }
 0x1be   : > { %v2273_v57 = vadd.f32 %v2251_v31, %v2067_v52 }
 0x1bf   : > { %v1713_v38 = vpop.f32.mrf.mxu2 }
 0x1c0   : > { %v2293_v42 = vadd.f32 %v3802_v54, %v2273_v57  ;;  %v1734_v26 = vadd.f32 %v1713_v38, %v1583_v23 }
 0x1c2   : > { %v2309_v35 = vmax.f32 %v2293_v42, 0.0  ;;  %v2253_v62 = vpop.f32.mrf.mxu0 }
 0x1c3   : > { %v2047_v11 = vpop.f32.mrf.mxu3 }
 0x1c4   : > { %v2325_v20 = vadd.f32 %v2324_v18, %v2309_v35  ;;  %v2068_v21 = vadd.f32 %v2047_v11, %v1734_v26  ;;  %v1567_v9 = vpop.f32.mrf.mxu1 }
 0x1c5   : > { %v1585_v16 = vadd.f32 %v1567_v9, %v3796_v32  ;;  %v2313_v32 = vld [vmem:[#allocation2] sm:$0x1] }
 0x1c6   : > { %v2274_v50 = vadd.f32 %v2253_v62, %v2068_v21 }
 0x1c7   : > { %v1716_v44 = vpop.f32.mrf.mxu2 }
 0x1c8   : > { %v2294_v36 = vadd.f32 %v3802_v54, %v2274_v50  ;;  %v1735_v48 = vadd.f32 %v1716_v44, %v1584_v55 }
 0x1ca   : > { %v2310_v45 = vmax.f32 %v2294_v36, 0.0  ;;  %v2256_v15 = vpop.f32.mrf.mxu0 }
 0x1cb   : > { %v2050_v39 = vpop.f32.mrf.mxu3 }
 0x1cc   : > { %v2326_v24 = vadd.f32 %v2325_v20, %v2310_v45  ;;  %v2069_v27 = vadd.f32 %v2050_v39, %v1735_v48 }
 0x1ce   : > { %v2275_v19 = vadd.f32 %v2256_v15, %v2069_v27 }
 0x1cf   : > { %v1718_v60 = vpop.f32.mrf.mxu2 }
 0x1d0   : > { %v2295_v6 = vadd.f32 %v3802_v54, %v2275_v19  ;;  %v1736_v22 = vadd.f32 %v1718_v60, %v1585_v16 }
 0x1d2   : > { %v2311_v13 = vmax.f32 %v2295_v6, 0.0  ;;  %v2258_v56 = vpop.f32.mrf.mxu0 }
 0x1d3   : > { %v2052_v49 = vpop.f32.mrf.mxu3 }
 0x1d4   : > { %v2327_v4 = vadd.f32 %v2326_v24, %v2311_v13  ;;  %v2070_v40 = vadd.f32 %v2052_v49, %v1736_v22 }
 0x1d6   : > { %v2276_v17 = vadd.f32 %v2258_v56, %v2070_v40 }
 0x1d8   : > { %v2296_v28 = vadd.f32 %v3802_v54, %v2276_v17 }
 0x1da   : > { %v2312_v63 = vmax.f32 %v2296_v28, 0.0 }
 0x1dc   : > { %v2328_v34 = vadd.f32 %v2327_v4, %v2312_v63 }
 0x1de   : > { %v2329_v0 = vrot.slane %v2328_v34, 4 }
 0x1e0   : > { %v2330_v53 = vadd.f32 %v2329_v0, %v2328_v34 }
 0x1e2   : > { %v2331_v41 = vrot.slane %v2330_v53, 2 }
 0x1e4   : > { %v2332_v25 = vadd.f32 %v2331_v41, %v2330_v53 }
 0x1e6   : > { %v2333_v1 = vrot.slane %v2332_v25, 1 }
 0x1e8   : > { %v2334_v14 = vadd.f32 %v2333_v1, %v2332_v25  ;;  %2340 = sbr.rel (%p2766_p0) target bundleno = 654 (0x28e), region = 48 }
 0x1ea   : > { %v2335_v30 = vadd.f32 %v2334_v14, %v2313_v32 }
 0x1ec   : > { %2336 = vst [vmem:[#allocation2] sm:$0x1] %v2335_v30 }
 0x1ed   : > { %v2357_v46 = vld [vmem:[%s3934_s3 + $0x78] sm:$0xff]  ;;  %v2356_v54 = vld [vmem:[%s3934_s3 + $0x70] sm:$0xff]  ;;  %v2355_v2 = vld [vmem:[%s3934_s3 + $0x68] sm:$0xff]  ;;  %vm2379_vm8 = vcmask 8192  }
 0x1ee   : > { %2359 = vmatpush.msra.mxu0 %v2357_v46  ;;  %v2354_v7 = vld [vmem:[%s3934_s3 + $0x60] sm:$0xff]  ;;  %v2353_v59 = vld [vmem:[%s3934_s3 + $0x58] sm:$0xff]  ;;  %v2352_v58 = vld [vmem:[%s3934_s3 + $0x50] sm:$0xff] }
 0x1ef   : > { %v2351_v12 = vld [vmem:[%s3934_s3 + $0x48] sm:$0xff]  ;;  %v2350_v3 = vld [vmem:[%s3934_s3 + $0x40] sm:$0xff]  ;;  %v2349_v47 = vld [vmem:[%s3934_s3 + $0x38] sm:$0xff] }
 0x1f0   : > { %2360 = vmatpush.msra.mxu0 %v2356_v54  ;;  %v2348_v37 = vld [vmem:[%s3934_s3 + $0x30] sm:$0xff]  ;;  %v2347_v10 = vld [vmem:[%s3934_s3 + $0x28] sm:$0xff]  ;;  %v2346_v61 = vld [vmem:[%s3934_s3 + $0x20] sm:$0xff] }
 0x1f1   : > { %v2345_v51 = vld [vmem:[%s3934_s3 + $0x18] sm:$0xff]  ;;  %v2344_v5 = vld [vmem:[%s3934_s3 + $0x10] sm:$0xff]  ;;  %v2343_v8 = vld [vmem:[%s3934_s3 + $0x8] sm:$0xff] }
 0x1f2   : > { %2361 = vmatpush.msra.mxu0 %v2355_v2  ;;  %v2342_v29 = vld [vmem:[%s3934_s3] sm:$0xff] }
 0x1f3   : > { %v2341_v31 = vld [vmem:[#allocation2] sm:$0x1] }
 0x1f4   : > { %2362 = vmatpush.msra.mxu0 %v2354_v7  ;;  %v2358_v33 = vld [vmem:[%s3935_s4] sm:$0x1] }
 0x1f6   : > { %2363 = vmatpush.msra.mxu0 %v2353_v59 }
 0x1f8   : > { %2364 = vmatpush.msra.mxu0 %v2352_v58 }
 0x1fa   : > { %2365 = vmatpush.msra.mxu0 %v2351_v12 }
 0x1fc   : > { %2366 = vmatpush.msra.mxu0 %v2350_v3 }
 0x1fe   : > { %2367 = vmatpush.msra.mxu0 %v2349_v47 }
 0x200   : > { %2368 = vmatpush.msra.mxu0 %v2348_v37 }
 0x202   : > { %2369 = vmatpush.msra.mxu0 %v2347_v10 }
 0x204   : > { %2370 = vmatpush.msra.mxu0 %v2346_v61 }
 0x206   : > { %2371 = vmatpush.msra.mxu0 %v2345_v51 }
 0x208   : > { %2372 = vmatpush.msra.mxu0 %v2344_v5 }
 0x20a   : > { %2373 = vmatpush.msra.mxu0 %v2343_v8 }
 0x20c   : > { %2374 = vmatpush.msra.mxu0 %v2342_v29 }
 0x20d   : > { %2375 = vmatmul.f32.vlgmr.msra.gmra.mxu0 %v2341_v31 }
 0x28a   : > { %v2376_v18 = vpop.f32.mrf.mxu0 }
 0x28b   : > { %v2377_v52 = vadd.f32 %v2376_v18, %v2358_v33 }
 0x28d   : > { %2380 = vst.msk [vmem:[%s3076_s17] sm:$0x1] %vm2379_vm8, %v2377_v52 }
 0x28e PF: > { %s2390_s11 = scalar_lea.hbm %s3936_s5, %s2952_s22  ;;  %s2392_s12 = sshll.u32 %s3076_s17, 4  ;;  %s2393_s12 = int_to_ptr.vmem [resolvable:$true] %s2392_s12 }
 0x28f   : > { %s2394_s13 = sshll.u32 %s2390_s11, 4  ;;  %s2382_s14 = scalar_lea.sflag [#allocation4], %s237_s10  ;;  %s2395_s13 = int_to_ptr.hbm [resolvable:$true] %s2394_s13 }
 0x290   : > { %s2884_s15 = sshra.s32 %s2395_s13, 4  ;;  %s2890_s27 = scalar_lea.hbm %s3936_s5, 2  ;;  %s2885_s15 = int_to_ptr.hbm [resolvable:$true] %s2884_s15 }
 0x291   : > { %s2886_s21 = scalar_lea.hbm %s2885_s15, 1  ;;  %p2891_p5 = scmp.lt.s32.totalorder %s2885_s15, %s3936_s5 }
 0x292   : > { %p2887_p1 = scmp.ne.s32.totalorder %s2885_s15, %s2886_s21  ;;  %p2892_p6 = scmp.lt.s32.totalorder %s2890_s27, %s2886_s21 }
 0x294   : > { %p2888_p2 = pnand %p2887_p1, %p3046_p3  ;;  %p2893_p7 = por %p2892_p6, %p2891_p5 }
 0x296   : > { %p2889_p4 = pneg %p2888_p2 }
 0x298   : > { %p2894_p8 = pnand %p2893_p7, %p2889_p4 }
 0x29a   : > { %2897 = shalt.err (!%p2894_p8)
}
 0x29b   : > { %2797 = dma.vmem_to_hbm [thread:$0]  (%p3046_p3), %s2393_s12, 16, %s2395_s13, %s2382_s14  }
 0x29c PF: > { %p2803_p10 = scmp.ge.s32.totalorder %s2964_s25, 2  ;;  %s2406_s22 = sand.u32 1, %s2936_s18  }
 0x29d   : > { %s2407_s10 = scalar_lea.sflag [#allocation4], %s2406_s22 }
 0x29e   : > { %p2800_p11 = pnand %p2803_p10, %p3056_p9 }
 0x2a0   : > { %p2801_p12 = pneg %p2800_p11 }
 0x2a2   : > { %2931 = dma.done.wait (%p2801_p12), %s2407_s10, 16  }
 0x2a3   : > { %2933 = vsyncadd (%p2801_p12), %s2407_s10, 4294967280  ;;  %s18_s25 = sadd.s32 1, %s2964_s25   ;;  %s3943_s18 = smov %s2940_s19 }
 0x2a4   : > { %p15_p13 = scmp.ge.s32.totalorder %s18_s25, 6   ;;  %s3944_s19 = smov %s2944_s20 }
 0x2a5   : > { %s3945_s20 = smov %s3064_s9  ;;  %s3946_s21 = smov %s2956_s23 }
 0x2a6   : > { %s3947_s22 = smov %s2960_s24  ;;  %s3948_s23 = smov %s3951_s28 }
 0x2a7   : > { %s3949_s24 = smov %s3955_s29  ;;  %17 = sbr.rel (!%p15_p13) target bundleno = 5 (0x5), region = 93 }
 0x2ac   :  { %2412 = vsyncpa [#allocation4], 1 }
 0x2ad   :  { %2414 = vsyncpa [#allocation4 + $0x1], 1 }

</bundles_post_ra>
